<compile_context>
chip_gen: v6e
topology: v6e:2x2x1
jax: 0.10.0
libtpu: 0.0.40
codegen_flags: <defaults>
</compile_context>

<pallas_src>
import functools
import math
import numpy as np
import jax
import jax.numpy as jnp
from jax.experimental import pallas as pl
from jax.experimental.pallas import tpu as pltpu


# ----------------------------------------------------------------------------
# Global knobs
# ----------------------------------------------------------------------------
def _compute_vmem_limit():
    cap = 64 * 1024 * 1024                      # safe fallback (<= every gen)
    try:
        cap = int(pltpu.get_tpu_info().vmem_capacity_bytes)
    except Exception:
        pass
    # ~85% of physical VMEM, capped (v5e/v6e: ~108 MiB, v7x: ~54 MiB).
    return min(int(cap * 0.85), 112 * 1024 * 1024)


_VMEM_LIMIT = _compute_vmem_limit()


def _probe_buffered():
    try:
        pl.BlockSpec((8, 128), lambda i: (0, 0), pipeline_mode=pl.Buffered(1))
        return True
    except Exception:
        return False


_HAS_BUFFERED = _probe_buffered()


def _const_spec(shape, grid_rank):
    """BlockSpec for an operand whose block index never changes: single-buffer it."""
    zeros = (0,) * len(shape)
    if grid_rank == 2:
        idx = lambda i, j: zeros
    elif grid_rank == 3:
        idx = lambda i, j, k: zeros
    else:
        idx = lambda *a: zeros
    if _HAS_BUFFERED:
        return pl.BlockSpec(shape, idx, pipeline_mode=pl.Buffered(1))
    return pl.BlockSpec(shape, idx)


def _tile(dim, target):
    """Use `target` tile if it divides `dim`, otherwise fall back to full dim."""
    if dim >= target and dim % target == 0:
        return target
    return dim


# ----------------------------------------------------------------------------
# Tiled matmul + bias (final vocab projection; bf16 operands, f32 accumulator)
# ----------------------------------------------------------------------------
def _matmul_bias_kernel(x_ref, w_ref, b_ref, o_ref, acc_ref):
    @pl.when(pl.program_id(2) == 0)
    def _():
        acc_ref[...] = jnp.zeros_like(acc_ref)

    acc_ref[...] += jnp.dot(x_ref[...].astype(jnp.bfloat16), w_ref[...],
                            preferred_element_type=jnp.float32)

    @pl.when(pl.program_id(2) == pl.num_programs(2) - 1)
    def _():
        o_ref[...] = acc_ref[...] + b_ref[...]


def pallas_linear(x, w, b, tm=256, tn=512, tk=512):
    """x: [M, K] f32, w: [K, N] bf16, b: [N] f32 -> [M, N] f32."""
    M, K = x.shape
    N = w.shape[1]
    tm, tn, tk = _tile(M, tm), _tile(N, tn), _tile(K, tk)
    grid = (M // tm, N // tn, K // tk)
    return pl.pallas_call(
        _matmul_bias_kernel,
        grid=grid,
        out_shape=jax.ShapeDtypeStruct((M, N), jnp.float32),
        in_specs=[
            pl.BlockSpec((tm, tk), lambda i, j, k: (i, k)),
            pl.BlockSpec((tk, tn), lambda i, j, k: (k, j)),
            pl.BlockSpec((1, tn), lambda i, j, k: (0, j)),
        ],
        out_specs=pl.BlockSpec((tm, tn), lambda i, j, k: (i, j)),
        scratch_shapes=[pltpu.VMEM((tm, tn), jnp.float32)],
        compiler_params=pltpu.CompilerParams(
            dimension_semantics=("parallel", "parallel", "arbitrary"),
            vmem_limit_bytes=_VMEM_LIMIT),
    )(x, w, b.reshape(1, N))


# ----------------------------------------------------------------------------
# Fused multi-head attention + output projection + residual + LayerNorm
# Grid: (batch, query-tile).  K/V projected from the full x_kv block per step.
# ----------------------------------------------------------------------------
def _mha_ln_kernel(xq_ref, xkv_ref, m_ref,
                   wq_ref, bq_ref, wkv_ref, bkv_ref, wo_ref, bo_ref,
                   g_ref, b_ref, o_ref, ctx_ref, *, num_heads, scale, eps):
    xq = xq_ref[0]                               # (tq, D) f32
    xkv = xkv_ref[0]                             # (Sk, D) f32
    bias = m_ref[0].astype(jnp.float32)          # (1|tq, Sk) additive mask bias

    D = xq.shape[-1]
    Dh = D // num_heads

    xq_b = xq.astype(jnp.bfloat16)
    xkv_b = xkv.astype(jnp.bfloat16)

    # Q projection (scale folded in once) + fused K|V projection. bf16 x bf16,
    # f32 accumulation on the MXU.
    q = (jnp.dot(xq_b, wq_ref[...], preferred_element_type=jnp.float32)
         + bq_ref[...]) * scale
    kv = jnp.dot(xkv_b, wkv_ref[...], preferred_element_type=jnp.float32) + bkv_ref[...]
    k = kv[:, :D]
    v = kv[:, D:]

    # TODO(synk): group heads so the MXU contraction/output width is >=128
    # at realistic Dh; per-head loop kept here for small-Dh robustness.
    for h in range(num_heads):                   # static unroll over heads
        sl = slice(h * Dh, (h + 1) * Dh)
        qh = q[:, sl].astype(jnp.bfloat16)       # (tq, Dh)
        kh = k[:, sl].astype(jnp.bfloat16)       # (Sk, Dh)
        vh = v[:, sl].astype(jnp.bfloat16)       # (Sk, Dh)
        s = jax.lax.dot_general(
            qh, kh, (((1,), (1,)), ((), ())),
            preferred_element_type=jnp.float32)  # (tq, Sk)
        s = s + bias                             # additive mask bias (no select)
        s = s - jnp.max(s, axis=-1, keepdims=True)
        p = jnp.exp(s)
        p = p * pl.reciprocal(jnp.sum(p, axis=-1, keepdims=True), approx=True)
        # Write this head's context into its lane slice of the scratch buffer
        # (avoids an H-way concat / vreg copies).
        ctx_ref[:, sl] = jnp.dot(p.astype(jnp.bfloat16), vh,
                                 preferred_element_type=jnp.float32)

    # Output projection + residual + LayerNorm, all in VMEM, f32 math.
    proj = jnp.dot(ctx_ref[...].astype(jnp.bfloat16), wo_ref[...],
                   preferred_element_type=jnp.float32) + bo_ref[...]
    z = xq + proj
    mu = jnp.mean(z, axis=-1, keepdims=True)
    var = jnp.mean((z - mu) * (z - mu), axis=-1, keepdims=True)
    zn = (z - mu) * jax.lax.rsqrt(var + eps)
    o_ref[0] = zn * g_ref[...] + b_ref[...]


def fused_mha_ln(p, x_q, x_kv, bias3, ln_g, ln_b, num_heads, eps=1e-5, tq_target=256):
    """x_q: [B, Sq, D], x_kv: [B, Sk, D], bias3: [B, {1|Sq}, Sk] additive bf16 bias."""
    B, Sq, D = x_q.shape
    Sk = x_kv.shape[1]
    Mq = bias3.shape[1]
    Dh = D // num_heads
    scale = float(1.0 / math.sqrt(Dh))
    tq = _tile(Sq, tq_target)
    nq = Sq // tq

    if Mq == Sq:                                  # per-query mask (e.g. causal)
        m_block = (1, tq, Sk)
        m_map = lambda b, q: (b, q, 0)
    else:                                         # padding mask broadcast over queries
        assert Mq == 1, "mask query dim must be 1 or Sq"
        m_block = (1, 1, Sk)
        m_map = lambda b, q: (b, 0, 0)

    return pl.pallas_call(
        functools.partial(_mha_ln_kernel, num_heads=num_heads, scale=scale, eps=eps),
        grid=(B, nq),
        out_shape=jax.ShapeDtypeStruct((B, Sq, D), jnp.float32),
        in_specs=[
            pl.BlockSpec((1, tq, D), lambda b, q: (b, q, 0)),   # x_q (query tile)
            pl.BlockSpec((1, Sk, D), lambda b, q: (b, 0, 0)),   # x_kv (full)
            pl.BlockSpec(m_block, m_map),                       # additive mask bias
            _const_spec((D, D), 2),                             # wq   (bf16)
            _const_spec((1, D), 2),                             # bq
            _const_spec((D, 2 * D), 2),                         # wkv  (bf16, K|V fused)
            _const_spec((1, 2 * D), 2),                         # bkv
            _const_spec((D, D), 2),                             # wo   (bf16)
            _const_spec((1, D), 2),                             # bo
            _const_spec((1, D), 2),                             # ln gamma
            _const_spec((1, D), 2),                             # ln beta
        ],
        out_specs=pl.BlockSpec((1, tq, D), lambda b, q: (b, q, 0)),
        scratch_shapes=[pltpu.VMEM((tq, D), jnp.float32)],      # per-head ctx buffer
        compiler_params=pltpu.CompilerParams(
            dimension_semantics=("parallel", "parallel"),
            vmem_limit_bytes=_VMEM_LIMIT),
    )(x_q, x_kv, bias3,
      p["wq"], p["bq"].reshape(1, D),
      p["wkv"], p["bkv"].reshape(1, 2 * D),
      p["wo"], p["bo"].reshape(1, D),
      ln_g.reshape(1, D), ln_b.reshape(1, D))


# ----------------------------------------------------------------------------
# Fused FFN (linear -> ReLU -> linear) + residual + LayerNorm
# Grid: (row-tile, F-tile); hidden dim tiled so resident weights stay bounded.
# ----------------------------------------------------------------------------
def _ffn_ln_kernel(x_ref, w1_ref, b1_ref, w2_ref, b2_ref, g_ref, b_ref,
                   o_ref, acc_ref, *, eps):
    f = pl.program_id(1)

    @pl.when(f == 0)
    def _():
        acc_ref[...] = jnp.zeros_like(acc_ref)

    x_b = x_ref[...].astype(jnp.bfloat16)                       # (tm, D)
    h = jnp.dot(x_b, w1_ref[...], preferred_element_type=jnp.float32) + b1_ref[...]
    h = jnp.maximum(h, 0.0)                                     # hidden stays in VMEM
    acc_ref[...] += jnp.dot(h.astype(jnp.bfloat16), w2_ref[...],
                            preferred_element_type=jnp.float32)

    @pl.when(f == pl.num_programs(1) - 1)
    def _():
        x = x_ref[...]
        z = x + acc_ref[...] + b2_ref[...]                      # residual + bias
        mu = jnp.mean(z, axis=-1, keepdims=True)
        var = jnp.mean((z - mu) * (z - mu), axis=-1, keepdims=True)
        zn = (z - mu) * jax.lax.rsqrt(var + eps)
        o_ref[...] = zn * g_ref[...] + b_ref[...]


def fused_ffn_ln(p, x2d, ln_g, ln_b, eps=1e-5, tm_target=256, tf_target=512):
    M, D = x2d.shape
    F = p["w1"].shape[1]
    tm = _tile(M, tm_target)
    tf = _tile(F, tf_target)
    grid = (M // tm, F // tf)
    return pl.pallas_call(
        functools.partial(_ffn_ln_kernel, eps=eps),
        grid=grid,
        out_shape=jax.ShapeDtypeStruct((M, D), jnp.float32),
        in_specs=[
            pl.BlockSpec((tm, D), lambda i, f: (i, 0)),   # x (resident across F)
            pl.BlockSpec((D, tf), lambda i, f: (0, f)),   # w1 chunk (bf16)
            pl.BlockSpec((1, tf), lambda i, f: (0, f)),   # b1 chunk
            pl.BlockSpec((tf, D), lambda i, f: (f, 0)),   # w2 chunk (bf16)
            _const_spec((1, D), 2),                       # b2
            _const_spec((1, D), 2),                       # ln gamma
            _const_spec((1, D), 2),                       # ln beta
        ],
        out_specs=pl.BlockSpec((tm, D), lambda i, f: (i, 0)),
        scratch_shapes=[pltpu.VMEM((tm, D), jnp.float32)],
        compiler_params=pltpu.CompilerParams(
            dimension_semantics=("parallel", "arbitrary"),
            vmem_limit_bytes=_VMEM_LIMIT),
    )(x2d, p["w1"], p["b1"].reshape(1, F), p["w2"], p["b2"].reshape(1, D),
      ln_g.reshape(1, D), ln_b.reshape(1, D))


# ----------------------------------------------------------------------------
# Model glue (plain JAX: embeddings, positional encoding, layer loop)
# ----------------------------------------------------------------------------
def _prep_mask_bias(mask4, batch):
    """(B|1, 1, Mq, Sk) 0/1 mask -> (B, Mq, Sk) bf16 additive bias (0 or -1e9)."""
    m = mask4[:, 0]                                   # (B|1, Mq, Sk)
    m = jnp.broadcast_to(m, (batch,) + m.shape[1:])
    return jnp.where(m == 0, -1000000000.0, 0.0).astype(jnp.bfloat16)


def encoder_layer(p, x, src_bias3, num_heads):
    B, S, D = x.shape
    x1 = fused_mha_ln(p["self_attn"], x, x, src_bias3, p["ln1_g"], p["ln1_b"], num_heads)
    x2 = fused_ffn_ln(p["ff"], x1.reshape(B * S, D), p["ln2_g"], p["ln2_b"])
    return x2.reshape(B, S, D)


def decoder_layer(p, x, enc_out, src_bias3, tgt_bias3, num_heads):
    B, S, D = x.shape
    x1 = fused_mha_ln(p["self_attn"], x, x, tgt_bias3, p["ln1_g"], p["ln1_b"], num_heads)
    x2 = fused_mha_ln(p["cross_attn"], x1, enc_out, src_bias3,
                      p["ln2_g"], p["ln2_b"], num_heads)
    x3 = fused_ffn_ln(p["ff"], x2.reshape(B * S, D), p["ln3_g"], p["ln3_b"])
    return x3.reshape(B, S, D)


def positional_encoding(d_model, max_len):
    position = np.arange(max_len, dtype=np.float32)[:, None]
    div_term = np.exp(np.arange(0, d_model, 2, dtype=np.float32)
                      * (-np.log(10000.0) / d_model))
    pe = np.zeros((max_len, d_model), dtype=np.float32)
    pe[:, 0::2] = np.sin(position * div_term)
    pe[:, 1::2] = np.cos(position * div_term)
    return jnp.asarray(pe)[None, :, :]               # (1, max_len, d_model)


def transformer_forward(params, src, tgt, src_mask, tgt_mask, cfg):
    num_heads = cfg["num_heads"]
    B = src.shape[0]
    pe = params["pe"]

    src_bias3 = _prep_mask_bias(src_mask, B)
    tgt_bias3 = _prep_mask_bias(tgt_mask, B)

    # ---- Encoder ----
    x = jnp.take(params["enc_emb"], src, axis=0)      # (B, Ss, D)
    x = x + pe[:, : x.shape[1], :]
    for lp in params["enc_layers"]:
        x = encoder_layer(lp, x, src_bias3, num_heads)
    enc_out = x

    # ---- Decoder ----
    y = jnp.take(params["dec_emb"], tgt, axis=0)       # (B, St, D)
    y = y + pe[:, : y.shape[1], :]
    for lp in params["dec_layers"]:
        y = decoder_layer(lp, y, enc_out, src_bias3, tgt_bias3, num_heads)

    # ---- Output projection (tiled accumulator matmul, lane-dense padded N) ----
    B, St, D = y.shape
    V = cfg["tgt_vocab_size"]
    logits = pallas_linear(y.reshape(B * St, D), params["out_w"], params["out_b"])
    logits = logits[:, :V]                             # drop vocab padding
    return logits.reshape(B, St, V)


# ----------------------------------------------------------------------------
# Deterministic parameter initialization (matmul weights stored in bf16)
# ----------------------------------------------------------------------------
def _linear_params(key, d_in, d_out):
    kw, _ = jax.random.split(key)
    return (jax.random.normal(kw, (d_in, d_out), jnp.float32) * 0.02,
            jnp.zeros((d_out,), jnp.float32))


def _mha_params(key, d_model):
    ks = jax.random.split(key, 4)
    wq, bq = _linear_params(ks[0], d_model, d_model)
    wk, bk = _linear_params(ks[1], d_model, d_model)
    wv, bv = _linear_params(ks[2], d_model, d_model)
    wo, bo = _linear_params(ks[3], d_model, d_model)
    # K|V weights fused once at init so every forward uses one wide matmul.
    return dict(wq=wq.astype(jnp.bfloat16), bq=bq,
                wkv=jnp.concatenate([wk, wv], axis=1).astype(jnp.bfloat16),
                bkv=jnp.concatenate([bk, bv], axis=0),
                wo=wo.astype(jnp.bfloat16), bo=bo)


def _ff_params(key, d_model, d_ff):
    k1, k2 = jax.random.split(key)
    w1, b1 = _linear_params(k1, d_model, d_ff)
    w2, b2 = _linear_params(k2, d_ff, d_model)
    return dict(w1=w1.astype(jnp.bfloat16), b1=b1,
                w2=w2.astype(jnp.bfloat16), b2=b2)


def _enc_layer_params(key, d_model, d_ff):
    k1, k2 = jax.random.split(key)
    return dict(self_attn=_mha_params(k1, d_model),
                ff=_ff_params(k2, d_model, d_ff),
                ln1_g=jnp.ones((d_model,), jnp.float32), ln1_b=jnp.zeros((d_model,), jnp.float32),
                ln2_g=jnp.ones((d_model,), jnp.float32), ln2_b=jnp.zeros((d_model,), jnp.float32))


def _dec_layer_params(key, d_model, d_ff):
    k1, k2, k3 = jax.random.split(key, 3)
    return dict(self_attn=_mha_params(k1, d_model),
                cross_attn=_mha_params(k2, d_model),
                ff=_ff_params(k3, d_model, d_ff),
                ln1_g=jnp.ones((d_model,), jnp.float32), ln1_b=jnp.zeros((d_model,), jnp.float32),
                ln2_g=jnp.ones((d_model,), jnp.float32), ln2_b=jnp.zeros((d_model,), jnp.float32),
                ln3_g=jnp.ones((d_model,), jnp.float32), ln3_b=jnp.zeros((d_model,), jnp.float32))


def init_params(key, cfg):
    keys = jax.random.split(key, 4 + 2 * cfg["num_layers"])
    enc_emb = jax.random.normal(keys[0], (cfg["src_vocab_size"], cfg["d_model"]), jnp.float32) * 0.02
    dec_emb = jax.random.normal(keys[1], (cfg["tgt_vocab_size"], cfg["d_model"]), jnp.float32) * 0.02

    # Vocab projection: pad N up to a multiple of 128 -> lane-dense (unmasked) stores.
    V = cfg["tgt_vocab_size"]
    V_pad = ((V + 127) // 128) * 128
    out_w_f32, out_b_f32 = _linear_params(keys[2], cfg["d_model"], V)
    out_w = jnp.pad(out_w_f32, ((0, 0), (0, V_pad - V))).astype(jnp.bfloat16)
    out_b = jnp.pad(out_b_f32, (0, V_pad - V))

    enc_layers = [_enc_layer_params(keys[3 + i], cfg["d_model"], cfg["d_ff"])
                  for i in range(cfg["num_layers"])]
    dec_layers = [_dec_layer_params(keys[3 + cfg["num_layers"] + i],
                                    cfg["d_model"], cfg["d_ff"])
                  for i in range(cfg["num_layers"])]
    return dict(enc_emb=enc_emb, dec_emb=dec_emb, out_w=out_w, out_b=out_b,
                enc_layers=enc_layers, dec_layers=dec_layers,
                pe=positional_encoding(cfg["d_model"], cfg["max_len"]))


# ----------------------------------------------------------------------------
# Main
# ----------------------------------------------------------------------------
if __name__ == "__main__":
    cfg = dict(src_vocab_size=50, tgt_vocab_size=60, d_model=32, num_heads=4,
               num_layers=2, d_ff=64, max_len=16)

    key = jax.random.PRNGKey(0)
    k_param, k_src, k_tgt = jax.random.split(key, 3)
    params = init_params(k_param, cfg)

    B, S_src, S_tgt = 2, 8, 8
    src = jax.random.randint(k_src, (B, S_src), 0, cfg["src_vocab_size"])
    tgt = jax.random.randint(k_tgt, (B, S_tgt), 0, cfg["tgt_vocab_size"])

    # src_mask: all-ones padding mask (B, 1, 1, S_src); tgt_mask: causal (B, 1, S_tgt, S_tgt)
    src_mask = jnp.ones((B, 1, 1, S_src), jnp.float32)
    tgt_mask = jnp.tril(jnp.ones((S_tgt, S_tgt), jnp.float32))[None, None, :, :]
    tgt_mask = jnp.broadcast_to(tgt_mask, (B, 1, S_tgt, S_tgt))

    # Jit the whole forward pass; cfg (python ints) is closed over -> static.
    fwd = jax.jit(functools.partial(transformer_forward, cfg=cfg))

    logits = fwd(params, src, tgt, src_mask, tgt_mask)
    jax.block_until_ready(logits)
    assert logits.shape == (B, S_tgt, cfg["tgt_vocab_size"])
    assert bool(jnp.all(jnp.isfinite(logits)))
    print("KERNEL_OK")
</pallas_src>

<mosaic_0001>
module attributes {stable_mosaic.version = 11 : i64} {
  func.func @_mha_ln_kernel(%arg0: i32, %arg1: i32, %arg2: memref<1x8x32xf32, #tpu.memory_space<vmem>>, %arg3: memref<1x8x32xf32, #tpu.memory_space<vmem>>, %arg4: memref<1x8x8xbf16, #tpu.memory_space<vmem>>, %arg5: memref<32x32xbf16, #tpu.memory_space<vmem>>, %arg6: memref<1x32xf32, #tpu.memory_space<vmem>>, %arg7: memref<32x64xbf16, #tpu.memory_space<vmem>>, %arg8: memref<1x64xf32, #tpu.memory_space<vmem>>, %arg9: memref<32x32xbf16, #tpu.memory_space<vmem>>, %arg10: memref<1x32xf32, #tpu.memory_space<vmem>>, %arg11: memref<1x32xf32, #tpu.memory_space<vmem>>, %arg12: memref<1x32xf32, #tpu.memory_space<vmem>>, %arg13: memref<1x8x32xf32, #tpu.memory_space<vmem>>, %arg14: memref<8x32xf32, #tpu.memory_space<vmem>>) attributes {dimension_semantics = [#tpu.dimension_semantics<parallel>, #tpu.dimension_semantics<parallel>], iteration_bounds = array<i64: 2, 1>, scalar_prefetch = 0 : i64, scratch_operands = 1 : i64, tpu.core_type = #tpu.core_type<tc>, window_params = [{transform_indices = @transform_0, window_bounds = array<i64: 1, 8, 32>}, {transform_indices = @transform_1, window_bounds = array<i64: 1, 8, 32>}, {transform_indices = @transform_2, window_bounds = array<i64: 1, 8, 8>}, {pipeline_mode = #tpu.pipeline_mode<synchronous>, transform_indices = @transform_3, window_bounds = array<i64: 32, 32>}, {pipeline_mode = #tpu.pipeline_mode<synchronous>, transform_indices = @transform_4, window_bounds = array<i64: 1, 32>}, {pipeline_mode = #tpu.pipeline_mode<synchronous>, transform_indices = @transform_5, window_bounds = array<i64: 32, 64>}, {pipeline_mode = #tpu.pipeline_mode<synchronous>, transform_indices = @transform_6, window_bounds = array<i64: 1, 64>}, {pipeline_mode = #tpu.pipeline_mode<synchronous>, transform_indices = @transform_7, window_bounds = array<i64: 32, 32>}, {pipeline_mode = #tpu.pipeline_mode<synchronous>, transform_indices = @transform_8, window_bounds = array<i64: 1, 32>}, {pipeline_mode = #tpu.pipeline_mode<synchronous>, transform_indices = @transform_9, window_bounds = array<i64: 1, 32>}, {pipeline_mode = #tpu.pipeline_mode<synchronous>, transform_indices = @transform_10, window_bounds = array<i64: 1, 32>}, {transform_indices = @transform_11, window_bounds = array<i64: 1, 8, 32>}]} {
    %c0 = arith.constant 0 : index
    %c0_0 = arith.constant 0 : index
    %c0_1 = arith.constant 0 : index
    %0 = vector.load %arg2[%c0, %c0_0, %c0_1] : memref<1x8x32xf32, #tpu.memory_space<vmem>>, vector<1x8x32xf32>
    %1 = vector.shape_cast %0 : vector<1x8x32xf32> to vector<8x32xf32>
    %c0_2 = arith.constant 0 : index
    %c0_3 = arith.constant 0 : index
    %c0_4 = arith.constant 0 : index
    %2 = vector.load %arg3[%c0_2, %c0_3, %c0_4] : memref<1x8x32xf32, #tpu.memory_space<vmem>>, vector<1x8x32xf32>
    %3 = vector.shape_cast %2 : vector<1x8x32xf32> to vector<8x32xf32>
    %c0_5 = arith.constant 0 : index
    %c0_6 = arith.constant 0 : index
    %c0_7 = arith.constant 0 : index
    %4 = vector.load %arg4[%c0_5, %c0_6, %c0_7] : memref<1x8x8xbf16, #tpu.memory_space<vmem>>, vector<1x8x8xbf16>
    %5 = vector.shape_cast %4 : vector<1x8x8xbf16> to vector<8x8xbf16>
    %6 = arith.extf %5 : vector<8x8xbf16> to vector<8x8xf32>
    %7 = arith.truncf %1 : vector<8x32xf32> to vector<8x32xbf16>
    %8 = arith.truncf %3 : vector<8x32xf32> to vector<8x32xbf16>
    %c0_8 = arith.constant 0 : index
    %c0_9 = arith.constant 0 : index
    %9 = vector.load %arg5[%c0_8, %c0_9] : memref<32x32xbf16, #tpu.memory_space<vmem>>, vector<32x32xbf16>
    %cst = arith.constant dense<0.000000e+00> : vector<8x32xf32>
    %10 = tpu.matmul %7, %9, %cst {dimension_numbers = #tpu.dot_dimension_numbers<[1], [0], [0], [1], [0, 0, 1, 1], [], []>} : vector<8x32xbf16>, vector<32x32xbf16>, vector<8x32xf32> -> vector<8x32xf32>
    %c0_10 = arith.constant 0 : index
    %c0_11 = arith.constant 0 : index
    %11 = vector.load %arg6[%c0_10, %c0_11] : memref<1x32xf32, #tpu.memory_space<vmem>>, vector<1x32xf32>
    %12 = vector.broadcast %11 : vector<1x32xf32> to vector<8x32xf32>
    %13 = arith.addf %10, %12 : vector<8x32xf32>
    %cst_12 = arith.constant 0.353553385 : f32
    %14 = vector.broadcast %cst_12 : f32 to vector<8x32xf32>
    %15 = arith.mulf %13, %14 : vector<8x32xf32>
    %c0_13 = arith.constant 0 : index
    %c0_14 = arith.constant 0 : index
    %16 = vector.load %arg7[%c0_13, %c0_14] : memref<32x64xbf16, #tpu.memory_space<vmem>>, vector<32x64xbf16>
    %cst_15 = arith.constant dense<0.000000e+00> : vector<8x64xf32>
    %17 = tpu.matmul %8, %16, %cst_15 {dimension_numbers = #tpu.dot_dimension_numbers<[1], [0], [0], [1], [0, 0, 1, 1], [], []>} : vector<8x32xbf16>, vector<32x64xbf16>, vector<8x64xf32> -> vector<8x64xf32>
    %c0_16 = arith.constant 0 : index
    %c0_17 = arith.constant 0 : index
    %18 = vector.load %arg8[%c0_16, %c0_17] : memref<1x64xf32, #tpu.memory_space<vmem>>, vector<1x64xf32>
    %19 = vector.broadcast %18 : vector<1x64xf32> to vector<8x64xf32>
    %20 = arith.addf %17, %19 : vector<8x64xf32>
    %21 = vector.extract_strided_slice %20 {offsets = [0, 0], sizes = [8, 32], strides = [1, 1]} : vector<8x64xf32> to vector<8x32xf32>
    %22 = vector.extract_strided_slice %20 {offsets = [0, 32], sizes = [8, 32], strides = [1, 1]} : vector<8x64xf32> to vector<8x32xf32>
    %23 = vector.extract_strided_slice %15 {offsets = [0, 0], sizes = [8, 8], strides = [1, 1]} : vector<8x32xf32> to vector<8x8xf32>
    %24 = arith.truncf %23 : vector<8x8xf32> to vector<8x8xbf16>
    %25 = vector.extract_strided_slice %21 {offsets = [0, 0], sizes = [8, 8], strides = [1, 1]} : vector<8x32xf32> to vector<8x8xf32>
    %26 = arith.truncf %25 : vector<8x8xf32> to vector<8x8xbf16>
    %27 = vector.extract_strided_slice %22 {offsets = [0, 0], sizes = [8, 8], strides = [1, 1]} : vector<8x32xf32> to vector<8x8xf32>
    %28 = arith.truncf %27 : vector<8x8xf32> to vector<8x8xbf16>
    %cst_18 = arith.constant dense<0.000000e+00> : vector<8x8xf32>
    %29 = tpu.matmul %24, %26, %cst_18 {dimension_numbers = #tpu.dot_dimension_numbers<[1], [1], [0], [0], [0, 0, 1, 0], [], []>} : vector<8x8xbf16>, vector<8x8xbf16>, vector<8x8xf32> -> vector<8x8xf32>
    %30 = arith.addf %29, %6 : vector<8x8xf32>
    %cst_19 = arith.constant dense<0xFF800000> : vector<8xf32>
    %31 = vector.multi_reduction <maximumf>, %30, %cst_19 [1] : vector<8x8xf32> to vector<8xf32>
    %32 = vector.shape_cast %31 : vector<8xf32> to vector<8x1xf32>
    %33 = vector.broadcast %32 : vector<8x1xf32> to vector<8x8xf32>
    %34 = arith.subf %30, %33 : vector<8x8xf32>
    %35 = math.exp %34 : vector<8x8xf32>
    %cst_20 = arith.constant dense<0.000000e+00> : vector<8xf32>
    %36 = vector.multi_reduction <add>, %35, %cst_20 [1] : vector<8x8xf32> to vector<8xf32>
    %37 = vector.shape_cast %36 : vector<8xf32> to vector<8x1xf32>
    %38 = tpu.reciprocal %37 {approx = true} : vector<8x1xf32> -> vector<8x1xf32>
    %39 = vector.broadcast %38 : vector<8x1xf32> to vector<8x8xf32>
    %40 = arith.mulf %35, %39 : vector<8x8xf32>
    %41 = arith.truncf %40 : vector<8x8xf32> to vector<8x8xbf16>
    %cst_21 = arith.constant dense<0.000000e+00> : vector<8x8xf32>
    %42 = tpu.matmul %41, %28, %cst_21 {dimension_numbers = #tpu.dot_dimension_numbers<[1], [0], [0], [1], [0, 0, 1, 1], [], []>} : vector<8x8xbf16>, vector<8x8xbf16>, vector<8x8xf32> -> vector<8x8xf32>
    %c0_22 = arith.constant 0 : index
    %c0_23 = arith.constant 0 : index
    %43 = vector.load %arg14[%c0_22, %c0_23] : memref<8x32xf32, #tpu.memory_space<vmem>>, vector<8x8xf32>
    tpu.vector_store %arg14[%c0_22, %c0_23], %42 {strides = array<i32>} : memref<8x32xf32, #tpu.memory_space<vmem>>, vector<8x8xf32>,
    %44 = vector.extract_strided_slice %15 {offsets = [0, 8], sizes = [8, 8], strides = [1, 1]} : vector<8x32xf32> to vector<8x8xf32>
    %45 = arith.truncf %44 : vector<8x8xf32> to vector<8x8xbf16>
    %46 = vector.extract_strided_slice %21 {offsets = [0, 8], sizes = [8, 8], strides = [1, 1]} : vector<8x32xf32> to vector<8x8xf32>
    %47 = arith.truncf %46 : vector<8x8xf32> to vector<8x8xbf16>
    %48 = vector.extract_strided_slice %22 {offsets = [0, 8], sizes = [8, 8], strides = [1, 1]} : vector<8x32xf32> to vector<8x8xf32>
    %49 = arith.truncf %48 : vector<8x8xf32> to vector<8x8xbf16>
    %cst_24 = arith.constant dense<0.000000e+00> : vector<8x8xf32>
    %50 = tpu.matmul %45, %47, %cst_24 {dimension_numbers = #tpu.dot_dimension_numbers<[1], [1], [0], [0], [0, 0, 1, 0], [], []>} : vector<8x8xbf16>, vector<8x8xbf16>, vector<8x8xf32> -> vector<8x8xf32>
    %51 = arith.addf %50, %6 : vector<8x8xf32>
    %cst_25 = arith.constant dense<0xFF800000> : vector<8xf32>
    %52 = vector.multi_reduction <maximumf>, %51, %cst_25 [1] : vector<8x8xf32> to vector<8xf32>
    %53 = vector.shape_cast %52 : vector<8xf32> to vector<8x1xf32>
    %54 = vector.broadcast %53 : vector<8x1xf32> to vector<8x8xf32>
    %55 = arith.subf %51, %54 : vector<8x8xf32>
    %56 = math.exp %55 : vector<8x8xf32>
    %cst_26 = arith.constant dense<0.000000e+00> : vector<8xf32>
    %57 = vector.multi_reduction <add>, %56, %cst_26 [1] : vector<8x8xf32> to vector<8xf32>
    %58 = vector.shape_cast %57 : vector<8xf32> to vector<8x1xf32>
    %59 = tpu.reciprocal %58 {approx = true} : vector<8x1xf32> -> vector<8x1xf32>
    %60 = vector.broadcast %59 : vector<8x1xf32> to vector<8x8xf32>
    %61 = arith.mulf %56, %60 : vector<8x8xf32>
    %62 = arith.truncf %61 : vector<8x8xf32> to vector<8x8xbf16>
    %cst_27 = arith.constant dense<0.000000e+00> : vector<8x8xf32>
    %63 = tpu.matmul %62, %49, %cst_27 {dimension_numbers = #tpu.dot_dimension_numbers<[1], [0], [0], [1], [0, 0, 1, 1], [], []>} : vector<8x8xbf16>, vector<8x8xbf16>, vector<8x8xf32> -> vector<8x8xf32>
    %c0_28 = arith.constant 0 : index
    %c8 = arith.constant 8 : index
    %64 = vector.load %arg14[%c0_28, %c8] : memref<8x32xf32, #tpu.memory_space<vmem>>, vector<8x8xf32>
    tpu.vector_store %arg14[%c0_28, %c8], %63 {strides = array<i32>} : memref<8x32xf32, #tpu.memory_space<vmem>>, vector<8x8xf32>,
    %65 = vector.extract_strided_slice %15 {offsets = [0, 16], sizes = [8, 8], strides = [1, 1]} : vector<8x32xf32> to vector<8x8xf32>
    %66 = arith.truncf %65 : vector<8x8xf32> to vector<8x8xbf16>
    %67 = vector.extract_strided_slice %21 {offsets = [0, 16], sizes = [8, 8], strides = [1, 1]} : vector<8x32xf32> to vector<8x8xf32>
    %68 = arith.truncf %67 : vector<8x8xf32> to vector<8x8xbf16>
    %69 = vector.extract_strided_slice %22 {offsets = [0, 16], sizes = [8, 8], strides = [1, 1]} : vector<8x32xf32> to vector<8x8xf32>
    %70 = arith.truncf %69 : vector<8x8xf32> to vector<8x8xbf16>
    %cst_29 = arith.constant dense<0.000000e+00> : vector<8x8xf32>
    %71 = tpu.matmul %66, %68, %cst_29 {dimension_numbers = #tpu.dot_dimension_numbers<[1], [1], [0], [0], [0, 0, 1, 0], [], []>} : vector<8x8xbf16>, vector<8x8xbf16>, vector<8x8xf32> -> vector<8x8xf32>
    %72 = arith.addf %71, %6 : vector<8x8xf32>
    %cst_30 = arith.constant dense<0xFF800000> : vector<8xf32>
    %73 = vector.multi_reduction <maximumf>, %72, %cst_30 [1] : vector<8x8xf32> to vector<8xf32>
    %74 = vector.shape_cast %73 : vector<8xf32> to vector<8x1xf32>
    %75 = vector.broadcast %74 : vector<8x1xf32> to vector<8x8xf32>
    %76 = arith.subf %72, %75 : vector<8x8xf32>
    %77 = math.exp %76 : vector<8x8xf32>
    %cst_31 = arith.constant dense<0.000000e+00> : vector<8xf32>
    %78 = vector.multi_reduction <add>, %77, %cst_31 [1] : vector<8x8xf32> to vector<8xf32>
    %79 = vector.shape_cast %78 : vector<8xf32> to vector<8x1xf32>
    %80 = tpu.reciprocal %79 {approx = true} : vector<8x1xf32> -> vector<8x1xf32>
    %81 = vector.broadcast %80 : vector<8x1xf32> to vector<8x8xf32>
    %82 = arith.mulf %77, %81 : vector<8x8xf32>
    %83 = arith.truncf %82 : vector<8x8xf32> to vector<8x8xbf16>
    %cst_32 = arith.constant dense<0.000000e+00> : vector<8x8xf32>
    %84 = tpu.matmul %83, %70, %cst_32 {dimension_numbers = #tpu.dot_dimension_numbers<[1], [0], [0], [1], [0, 0, 1, 1], [], []>} : vector<8x8xbf16>, vector<8x8xbf16>, vector<8x8xf32> -> vector<8x8xf32>
    %c0_33 = arith.constant 0 : index
    %c16 = arith.constant 16 : index
    %85 = vector.load %arg14[%c0_33, %c16] : memref<8x32xf32, #tpu.memory_space<vmem>>, vector<8x8xf32>
    tpu.vector_store %arg14[%c0_33, %c16], %84 {strides = array<i32>} : memref<8x32xf32, #tpu.memory_space<vmem>>, vector<8x8xf32>,
    %86 = vector.extract_strided_slice %15 {offsets = [0, 24], sizes = [8, 8], strides = [1, 1]} : vector<8x32xf32> to vector<8x8xf32>
    %87 = arith.truncf %86 : vector<8x8xf32> to vector<8x8xbf16>
    %88 = vector.extract_strided_slice %21 {offsets = [0, 24], sizes = [8, 8], strides = [1, 1]} : vector<8x32xf32> to vector<8x8xf32>
    %89 = arith.truncf %88 : vector<8x8xf32> to vector<8x8xbf16>
    %90 = vector.extract_strided_slice %22 {offsets = [0, 24], sizes = [8, 8], strides = [1, 1]} : vector<8x32xf32> to vector<8x8xf32>
    %91 = arith.truncf %90 : vector<8x8xf32> to vector<8x8xbf16>
    %cst_34 = arith.constant dense<0.000000e+00> : vector<8x8xf32>
    %92 = tpu.matmul %87, %89, %cst_34 {dimension_numbers = #tpu.dot_dimension_numbers<[1], [1], [0], [0], [0, 0, 1, 0], [], []>} : vector<8x8xbf16>, vector<8x8xbf16>, vector<8x8xf32> -> vector<8x8xf32>
    %93 = arith.addf %92, %6 : vector<8x8xf32>
    %cst_35 = arith.constant dense<0xFF800000> : vector<8xf32>
    %94 = vector.multi_reduction <maximumf>, %93, %cst_35 [1] : vector<8x8xf32> to vector<8xf32>
    %95 = vector.shape_cast %94 : vector<8xf32> to vector<8x1xf32>
    %96 = vector.broadcast %95 : vector<8x1xf32> to vector<8x8xf32>
    %97 = arith.subf %93, %96 : vector<8x8xf32>
    %98 = math.exp %97 : vector<8x8xf32>
    %cst_36 = arith.constant dense<0.000000e+00> : vector<8xf32>
    %99 = vector.multi_reduction <add>, %98, %cst_36 [1] : vector<8x8xf32> to vector<8xf32>
    %100 = vector.shape_cast %99 : vector<8xf32> to vector<8x1xf32>
    %101 = tpu.reciprocal %100 {approx = true} : vector<8x1xf32> -> vector<8x1xf32>
    %102 = vector.broadcast %101 : vector<8x1xf32> to vector<8x8xf32>
    %103 = arith.mulf %98, %102 : vector<8x8xf32>
    %104 = arith.truncf %103 : vector<8x8xf32> to vector<8x8xbf16>
    %cst_37 = arith.constant dense<0.000000e+00> : vector<8x8xf32>
    %105 = tpu.matmul %104, %91, %cst_37 {dimension_numbers = #tpu.dot_dimension_numbers<[1], [0], [0], [1], [0, 0, 1, 1], [], []>} : vector<8x8xbf16>, vector<8x8xbf16>, vector<8x8xf32> -> vector<8x8xf32>
    %c0_38 = arith.constant 0 : index
    %c24 = arith.constant 24 : index
    %106 = vector.load %arg14[%c0_38, %c24] : memref<8x32xf32, #tpu.memory_space<vmem>>, vector<8x8xf32>
    tpu.vector_store %arg14[%c0_38, %c24], %105 {strides = array<i32>} : memref<8x32xf32, #tpu.memory_space<vmem>>, vector<8x8xf32>,
    %c0_39 = arith.constant 0 : index
    %c0_40 = arith.constant 0 : index
    %107 = vector.load %arg14[%c0_39, %c0_40] : memref<8x32xf32, #tpu.memory_space<vmem>>, vector<8x32xf32>
    %108 = arith.truncf %107 : vector<8x32xf32> to vector<8x32xbf16>
    %c0_41 = arith.constant 0 : index
    %c0_42 = arith.constant 0 : index
    %109 = vector.load %arg9[%c0_41, %c0_42] : memref<32x32xbf16, #tpu.memory_space<vmem>>, vector<32x32xbf16>
    %cst_43 = arith.constant dense<0.000000e+00> : vector<8x32xf32>
    %110 = tpu.matmul %108, %109, %cst_43 {dimension_numbers = #tpu.dot_dimension_numbers<[1], [0], [0], [1], [0, 0, 1, 1], [], []>} : vector<8x32xbf16>, vector<32x32xbf16>, vector<8x32xf32> -> vector<8x32xf32>
    %c0_44 = arith.constant 0 : index
    %c0_45 = arith.constant 0 : index
    %111 = vector.load %arg10[%c0_44, %c0_45] : memref<1x32xf32, #tpu.memory_space<vmem>>, vector<1x32xf32>
    %112 = vector.broadcast %111 : vector<1x32xf32> to vector<8x32xf32>
    %113 = arith.addf %110, %112 : vector<8x32xf32>
    %114 = arith.addf %1, %113 : vector<8x32xf32>
    %cst_46 = arith.constant dense<0.000000e+00> : vector<8xf32>
    %115 = vector.multi_reduction <add>, %114, %cst_46 [1] : vector<8x32xf32> to vector<8xf32>
    %116 = vector.shape_cast %115 : vector<8xf32> to vector<8x1xf32>
    %cst_47 = arith.constant 3.200000e+01 : f32
    %117 = vector.broadcast %cst_47 : f32 to vector<8x1xf32>
    %118 = arith.divf %116, %117 : vector<8x1xf32>
    %119 = vector.broadcast %118 : vector<8x1xf32> to vector<8x32xf32>
    %120 = arith.subf %114, %119 : vector<8x32xf32>
    %121 = vector.broadcast %118 : vector<8x1xf32> to vector<8x32xf32>
    %122 = arith.subf %114, %121 : vector<8x32xf32>
    %123 = arith.mulf %120, %122 : vector<8x32xf32>
    %cst_48 = arith.constant dense<0.000000e+00> : vector<8xf32>
    %124 = vector.multi_reduction <add>, %123, %cst_48 [1] : vector<8x32xf32> to vector<8xf32>
    %125 = vector.shape_cast %124 : vector<8xf32> to vector<8x1xf32>
    %cst_49 = arith.constant 3.200000e+01 : f32
    %126 = vector.broadcast %cst_49 : f32 to vector<8x1xf32>
    %127 = arith.divf %125, %126 : vector<8x1xf32>
    %128 = vector.broadcast %118 : vector<8x1xf32> to vector<8x32xf32>
    %129 = arith.subf %114, %128 : vector<8x32xf32>
    %cst_50 = arith.constant 9.99999974E-6 : f32
    %130 = vector.broadcast %cst_50 : f32 to vector<8x1xf32>
    %131 = arith.addf %127, %130 : vector<8x1xf32>
    %132 = math.rsqrt %131 : vector<8x1xf32>
    %133 = vector.broadcast %132 : vector<8x1xf32> to vector<8x32xf32>
    %134 = arith.mulf %129, %133 : vector<8x32xf32>
    %c0_51 = arith.constant 0 : index
    %c0_52 = arith.constant 0 : index
    %135 = vector.load %arg11[%c0_51, %c0_52] : memref<1x32xf32, #tpu.memory_space<vmem>>, vector<1x32xf32>
    %136 = vector.broadcast %135 : vector<1x32xf32> to vector<8x32xf32>
    %137 = arith.mulf %134, %136 : vector<8x32xf32>
    %c0_53 = arith.constant 0 : index
    %c0_54 = arith.constant 0 : index
    %138 = vector.load %arg12[%c0_53, %c0_54] : memref<1x32xf32, #tpu.memory_space<vmem>>, vector<1x32xf32>
    %139 = vector.broadcast %138 : vector<1x32xf32> to vector<8x32xf32>
    %140 = arith.addf %137, %139 : vector<8x32xf32>
    %c0_55 = arith.constant 0 : index
    %c0_56 = arith.constant 0 : index
    %c0_57 = arith.constant 0 : index
    %141 = vector.load %arg13[%c0_55, %c0_56, %c0_57] : memref<1x8x32xf32, #tpu.memory_space<vmem>>, vector<1x8x32xf32>
    %142 = vector.shape_cast %141 : vector<1x8x32xf32> to vector<8x32xf32>
    %143 = vector.shape_cast %140 : vector<8x32xf32> to vector<1x8x32xf32>
    tpu.vector_store %arg13[%c0_55, %c0_56, %c0_57], %143 {strides = array<i32>} : memref<1x8x32xf32, #tpu.memory_space<vmem>>, vector<1x8x32xf32>,
    return
  }
  func.func @transform_0(%arg0: i32, %arg1: i32) -> (i32, i32, i32) {
    %c0_i32 = arith.constant 0 : i32
    %c0_i32_0 = arith.constant 0 : i32
    return %arg0, %arg1, %c0_i32 : i32, i32, i32
  }
  func.func @transform_1(%arg0: i32, %arg1: i32) -> (i32, i32, i32) {
    %c0_i32 = arith.constant 0 : i32
    %c0_i32_0 = arith.constant 0 : i32
    %c0_i32_1 = arith.constant 0 : i32
    return %arg0, %c0_i32, %c0_i32_0 : i32, i32, i32
  }
  func.func @transform_2(%arg0: i32, %arg1: i32) -> (i32, i32, i32) {
    %c0_i32 = arith.constant 0 : i32
    %c0_i32_0 = arith.constant 0 : i32
    return %arg0, %arg1, %c0_i32 : i32, i32, i32
  }
  func.func @transform_3(%arg0: i32, %arg1: i32) -> (i32, i32) {
    %c0_i32 = arith.constant 0 : i32
    %c0_i32_0 = arith.constant 0 : i32
    %c0_i32_1 = arith.constant 0 : i32
    return %c0_i32, %c0_i32_0 : i32, i32
  }
  func.func @transform_4(%arg0: i32, %arg1: i32) -> (i32, i32) {
    %c0_i32 = arith.constant 0 : i32
    %c0_i32_0 = arith.constant 0 : i32
    %c0_i32_1 = arith.constant 0 : i32
    return %c0_i32, %c0_i32_0 : i32, i32
  }
  func.func @transform_5(%arg0: i32, %arg1: i32) -> (i32, i32) {
    %c0_i32 = arith.constant 0 : i32
    %c0_i32_0 = arith.constant 0 : i32
    %c0_i32_1 = arith.constant 0 : i32
    return %c0_i32, %c0_i32_0 : i32, i32
  }
  func.func @transform_6(%arg0: i32, %arg1: i32) -> (i32, i32) {
    %c0_i32 = arith.constant 0 : i32
    %c0_i32_0 = arith.constant 0 : i32
    %c0_i32_1 = arith.constant 0 : i32
    return %c0_i32, %c0_i32_0 : i32, i32
  }
  func.func @transform_7(%arg0: i32, %arg1: i32) -> (i32, i32) {
    %c0_i32 = arith.constant 0 : i32
    %c0_i32_0 = arith.constant 0 : i32
    %c0_i32_1 = arith.constant 0 : i32
    return %c0_i32, %c0_i32_0 : i32, i32
  }
  func.func @transform_8(%arg0: i32, %arg1: i32) -> (i32, i32) {
    %c0_i32 = arith.constant 0 : i32
    %c0_i32_0 = arith.constant 0 : i32
    %c0_i32_1 = arith.constant 0 : i32
    return %c0_i32, %c0_i32_0 : i32, i32
  }
  func.func @transform_9(%arg0: i32, %arg1: i32) -> (i32, i32) {
    %c0_i32 = arith.constant 0 : i32
    %c0_i32_0 = arith.constant 0 : i32
    %c0_i32_1 = arith.constant 0 : i32
    return %c0_i32, %c0_i32_0 : i32, i32
  }
  func.func @transform_10(%arg0: i32, %arg1: i32) -> (i32, i32) {
    %c0_i32 = arith.constant 0 : i32
    %c0_i32_0 = arith.constant 0 : i32
    %c0_i32_1 = arith.constant 0 : i32
    return %c0_i32, %c0_i32_0 : i32, i32
  }
  func.func @transform_11(%arg0: i32, %arg1: i32) -> (i32, i32, i32) {
    %c0_i32 = arith.constant 0 : i32
    %c0_i32_0 = arith.constant 0 : i32
    return %arg0, %arg1, %c0_i32 : i32, i32, i32
  }
}

module attributes {stable_mosaic.version = 11 : i64} {
  func.func @_ffn_ln_kernel(%arg0: i32, %arg1: i32, %arg2: memref<16x32xf32, #tpu.memory_space<vmem>>, %arg3: memref<32x64xbf16, #tpu.memory_space<vmem>>, %arg4: memref<1x64xf32, #tpu.memory_space<vmem>>, %arg5: memref<64x32xbf16, #tpu.memory_space<vmem>>, %arg6: memref<1x32xf32, #tpu.memory_space<vmem>>, %arg7: memref<1x32xf32, #tpu.memory_space<vmem>>, %arg8: memref<1x32xf32, #tpu.memory_space<vmem>>, %arg9: memref<16x32xf32, #tpu.memory_space<vmem>>, %arg10: memref<16x32xf32, #tpu.memory_space<vmem>>) attributes {dimension_semantics = [#tpu.dimension_semantics<parallel>, #tpu.dimension_semantics<arbitrary>], iteration_bounds = array<i64: 1, 1>, scalar_prefetch = 0 : i64, scratch_operands = 1 : i64, tpu.core_type = #tpu.core_type<tc>, window_params = [{transform_indices = @transform_0, window_bounds = array<i64: 16, 32>}, {transform_indices = @transform_1, window_bounds = array<i64: 32, 64>}, {transform_indices = @transform_2, window_bounds = array<i64: 1, 64>}, {transform_indices = @transform_3, window_bounds = array<i64: 64, 32>}, {pipeline_mode = #tpu.pipeline_mode<synchronous>, transform_indices = @transform_4, window_bounds = array<i64: 1, 32>}, {pipeline_mode = #tpu.pipeline_mode<synchronous>, transform_indices = @transform_5, window_bounds = array<i64: 1, 32>}, {pipeline_mode = #tpu.pipeline_mode<synchronous>, transform_indices = @transform_6, window_bounds = array<i64: 1, 32>}, {transform_indices = @transform_7, window_bounds = array<i64: 16, 32>}]} {
    %c0_i32 = arith.constant 0 : i32
    %0 = arith.cmpi eq, %arg1, %c0_i32 : i32
    %1 = arith.extui %0 : i1 to i32
    %c0_i32_0 = arith.constant 0 : i32
    %2 = arith.cmpi ne, %1, %c0_i32_0 : i32
    scf.if %2 {
      %cst_16 = arith.constant 0.000000e+00 : f32
      %21 = vector.broadcast %cst_16 : f32 to vector<16x32xf32>
      %c0_17 = arith.constant 0 : index
      %c0_18 = arith.constant 0 : index
      %22 = vector.load %arg10[%c0_17, %c0_18] : memref<16x32xf32, #tpu.memory_space<vmem>>, vector<16x32xf32>
      tpu.vector_store %arg10[%c0_17, %c0_18], %21 {strides = array<i32>} : memref<16x32xf32, #tpu.memory_space<vmem>>, vector<16x32xf32>,
    } else {
    }
    %c0 = arith.constant 0 : index
    %c0_1 = arith.constant 0 : index
    %3 = vector.load %arg2[%c0, %c0_1] : memref<16x32xf32, #tpu.memory_space<vmem>>, vector<16x32xf32>
    %4 = arith.truncf %3 : vector<16x32xf32> to vector<16x32xbf16>
    %c0_2 = arith.constant 0 : index
    %c0_3 = arith.constant 0 : index
    %5 = vector.load %arg3[%c0_2, %c0_3] : memref<32x64xbf16, #tpu.memory_space<vmem>>, vector<32x64xbf16>
    %cst = arith.constant dense<0.000000e+00> : vector<16x64xf32>
    %6 = tpu.matmul %4, %5, %cst {dimension_numbers = #tpu.dot_dimension_numbers<[1], [0], [0], [1], [0, 0, 1, 1], [], []>} : vector<16x32xbf16>, vector<32x64xbf16>, vector<16x64xf32> -> vector<16x64xf32>
    %c0_4 = arith.constant 0 : index
    %c0_5 = arith.constant 0 : index
    %7 = vector.load %arg4[%c0_4, %c0_5] : memref<1x64xf32, #tpu.memory_space<vmem>>, vector<1x64xf32>
    %8 = vector.broadcast %7 : vector<1x64xf32> to vector<16x64xf32>
    %9 = arith.addf %6, %8 : vector<16x64xf32>
    %cst_6 = arith.constant 0.000000e+00 : f32
    %10 = vector.broadcast %cst_6 : f32 to vector<16x64xf32>
    %11 = arith.maximumf %9, %10 : vector<16x64xf32>
    %c0_7 = arith.constant 0 : index
    %c0_8 = arith.constant 0 : index
    %12 = vector.load %arg10[%c0_7, %c0_8] : memref<16x32xf32, #tpu.memory_space<vmem>>, vector<16x32xf32>
    %13 = arith.truncf %11 : vector<16x64xf32> to vector<16x64xbf16>
    %c0_9 = arith.constant 0 : index
    %c0_10 = arith.constant 0 : index
    %14 = vector.load %arg5[%c0_9, %c0_10] : memref<64x32xbf16, #tpu.memory_space<vmem>>, vector<64x32xbf16>
    %cst_11 = arith.constant dense<0.000000e+00> : vector<16x32xf32>
    %15 = tpu.matmul %13, %14, %cst_11 {dimension_numbers = #tpu.dot_dimension_numbers<[1], [0], [0], [1], [0, 0, 1, 1], [], []>} : vector<16x64xbf16>, vector<64x32xbf16>, vector<16x32xf32> -> vector<16x32xf32>
    %16 = arith.addf %12, %15 : vector<16x32xf32>
    %c0_12 = arith.constant 0 : index
    %c0_13 = arith.constant 0 : index
    %17 = vector.load %arg10[%c0_12, %c0_13] : memref<16x32xf32, #tpu.memory_space<vmem>>, vector<16x32xf32>
    tpu.vector_store %arg10[%c0_12, %c0_13], %16 {strides = array<i32>} : memref<16x32xf32, #tpu.memory_space<vmem>>, vector<16x32xf32>,
    %c0_i32_14 = arith.constant 0 : i32
    %18 = arith.cmpi eq, %arg1, %c0_i32_14 : i32
    %19 = arith.extui %18 : i1 to i32
    %c0_i32_15 = arith.constant 0 : i32
    %20 = arith.cmpi ne, %19, %c0_i32_15 : i32
    scf.if %20 {
      %c0_16 = arith.constant 0 : index
      %c0_17 = arith.constant 0 : index
      %21 = vector.load %arg2[%c0_16, %c0_17] : memref<16x32xf32, #tpu.memory_space<vmem>>, vector<16x32xf32>
      %c0_18 = arith.constant 0 : index
      %c0_19 = arith.constant 0 : index
      %22 = vector.load %arg10[%c0_18, %c0_19] : memref<16x32xf32, #tpu.memory_space<vmem>>, vector<16x32xf32>
      %23 = arith.addf %21, %22 : vector<16x32xf32>
      %c0_20 = arith.constant 0 : index
      %c0_21 = arith.constant 0 : index
      %24 = vector.load %arg6[%c0_20, %c0_21] : memref<1x32xf32, #tpu.memory_space<vmem>>, vector<1x32xf32>
      %25 = vector.broadcast %24 : vector<1x32xf32> to vector<16x32xf32>
      %26 = arith.addf %23, %25 : vector<16x32xf32>
      %cst_22 = arith.constant dense<0.000000e+00> : vector<16xf32>
      %27 = vector.multi_reduction <add>, %26, %cst_22 [1] : vector<16x32xf32> to vector<16xf32>
      %28 = vector.shape_cast %27 : vector<16xf32> to vector<16x1xf32>
      %cst_23 = arith.constant 3.200000e+01 : f32
      %29 = vector.broadcast %cst_23 : f32 to vector<16x1xf32>
      %30 = arith.divf %28, %29 : vector<16x1xf32>
      %31 = vector.broadcast %30 : vector<16x1xf32> to vector<16x32xf32>
      %32 = arith.subf %26, %31 : vector<16x32xf32>
      %33 = vector.broadcast %30 : vector<16x1xf32> to vector<16x32xf32>
      %34 = arith.subf %26, %33 : vector<16x32xf32>
      %35 = arith.mulf %32, %34 : vector<16x32xf32>
      %cst_24 = arith.constant dense<0.000000e+00> : vector<16xf32>
      %36 = vector.multi_reduction <add>, %35, %cst_24 [1] : vector<16x32xf32> to vector<16xf32>
      %37 = vector.shape_cast %36 : vector<16xf32> to vector<16x1xf32>
      %cst_25 = arith.constant 3.200000e+01 : f32
      %38 = vector.broadcast %cst_25 : f32 to vector<16x1xf32>
      %39 = arith.divf %37, %38 : vector<16x1xf32>
      %40 = vector.broadcast %30 : vector<16x1xf32> to vector<16x32xf32>
      %41 = arith.subf %26, %40 : vector<16x32xf32>
      %cst_26 = arith.constant 9.99999974E-6 : f32
      %42 = vector.broadcast %cst_26 : f32 to vector<16x1xf32>
      %43 = arith.addf %39, %42 : vector<16x1xf32>
      %44 = math.rsqrt %43 : vector<16x1xf32>
      %45 = vector.broadcast %44 : vector<16x1xf32> to vector<16x32xf32>
      %46 = arith.mulf %41, %45 : vector<16x32xf32>
      %c0_27 = arith.constant 0 : index
      %c0_28 = arith.constant 0 : index
      %47 = vector.load %arg7[%c0_27, %c0_28] : memref<1x32xf32, #tpu.memory_space<vmem>>, vector<1x32xf32>
      %48 = vector.broadcast %47 : vector<1x32xf32> to vector<16x32xf32>
      %49 = arith.mulf %46, %48 : vector<16x32xf32>
      %c0_29 = arith.constant 0 : index
      %c0_30 = arith.constant 0 : index
      %50 = vector.load %arg8[%c0_29, %c0_30] : memref<1x32xf32, #tpu.memory_space<vmem>>, vector<1x32xf32>
      %51 = vector.broadcast %50 : vector<1x32xf32> to vector<16x32xf32>
      %52 = arith.addf %49, %51 : vector<16x32xf32>
      %c0_31 = arith.constant 0 : index
      %c0_32 = arith.constant 0 : index
      %53 = vector.load %arg9[%c0_31, %c0_32] : memref<16x32xf32, #tpu.memory_space<vmem>>, vector<16x32xf32>
      tpu.vector_store %arg9[%c0_31, %c0_32], %52 {strides = array<i32>} : memref<16x32xf32, #tpu.memory_space<vmem>>, vector<16x32xf32>,
    } else {
    }
    return
  }
  func.func @transform_0(%arg0: i32, %arg1: i32) -> (i32, i32) {
    %c0_i32 = arith.constant 0 : i32
    %c0_i32_0 = arith.constant 0 : i32
    return %arg0, %c0_i32 : i32, i32
  }
  func.func @transform_1(%arg0: i32, %arg1: i32) -> (i32, i32) {
    %c0_i32 = arith.constant 0 : i32
    %c0_i32_0 = arith.constant 0 : i32
    return %c0_i32, %arg1 : i32, i32
  }
  func.func @transform_2(%arg0: i32, %arg1: i32) -> (i32, i32) {
    %c0_i32 = arith.constant 0 : i32
    %c0_i32_0 = arith.constant 0 : i32
    return %c0_i32, %arg1 : i32, i32
  }
  func.func @transform_3(%arg0: i32, %arg1: i32) -> (i32, i32) {
    %c0_i32 = arith.constant 0 : i32
    %c0_i32_0 = arith.constant 0 : i32
    return %arg1, %c0_i32 : i32, i32
  }
  func.func @transform_4(%arg0: i32, %arg1: i32) -> (i32, i32) {
    %c0_i32 = arith.constant 0 : i32
    %c0_i32_0 = arith.constant 0 : i32
    %c0_i32_1 = arith.constant 0 : i32
    return %c0_i32, %c0_i32_0 : i32, i32
  }
  func.func @transform_5(%arg0: i32, %arg1: i32) -> (i32, i32) {
    %c0_i32 = arith.constant 0 : i32
    %c0_i32_0 = arith.constant 0 : i32
    %c0_i32_1 = arith.constant 0 : i32
    return %c0_i32, %c0_i32_0 : i32, i32
  }
  func.func @transform_6(%arg0: i32, %arg1: i32) -> (i32, i32) {
    %c0_i32 = arith.constant 0 : i32
    %c0_i32_0 = arith.constant 0 : i32
    %c0_i32_1 = arith.constant 0 : i32
    return %c0_i32, %c0_i32_0 : i32, i32
  }
  func.func @transform_7(%arg0: i32, %arg1: i32) -> (i32, i32) {
    %c0_i32 = arith.constant 0 : i32
    %c0_i32_0 = arith.constant 0 : i32
    return %arg0, %c0_i32 : i32, i32
  }
}

module attributes {stable_mosaic.version = 11 : i64} {
  func.func @_mha_ln_kernel(%arg0: i32, %arg1: i32, %arg2: memref<1x8x32xf32, #tpu.memory_space<vmem>>, %arg3: memref<1x8x32xf32, #tpu.memory_space<vmem>>, %arg4: memref<1x1x8xbf16, #tpu.memory_space<vmem>>, %arg5: memref<32x32xbf16, #tpu.memory_space<vmem>>, %arg6: memref<1x32xf32, #tpu.memory_space<vmem>>, %arg7: memref<32x64xbf16, #tpu.memory_space<vmem>>, %arg8: memref<1x64xf32, #tpu.memory_space<vmem>>, %arg9: memref<32x32xbf16, #tpu.memory_space<vmem>>, %arg10: memref<1x32xf32, #tpu.memory_space<vmem>>, %arg11: memref<1x32xf32, #tpu.memory_space<vmem>>, %arg12: memref<1x32xf32, #tpu.memory_space<vmem>>, %arg13: memref<1x8x32xf32, #tpu.memory_space<vmem>>, %arg14: memref<8x32xf32, #tpu.memory_space<vmem>>) attributes {dimension_semantics = [#tpu.dimension_semantics<parallel>, #tpu.dimension_semantics<parallel>], iteration_bounds = array<i64: 2, 1>, scalar_prefetch = 0 : i64, scratch_operands = 1 : i64, tpu.core_type = #tpu.core_type<tc>, window_params = [{transform_indices = @transform_0, window_bounds = array<i64: 1, 8, 32>}, {transform_indices = @transform_1, window_bounds = array<i64: 1, 8, 32>}, {transform_indices = @transform_2, window_bounds = array<i64: 1, 1, 8>}, {pipeline_mode = #tpu.pipeline_mode<synchronous>, transform_indices = @transform_3, window_bounds = array<i64: 32, 32>}, {pipeline_mode = #tpu.pipeline_mode<synchronous>, transform_indices = @transform_4, window_bounds = array<i64: 1, 32>}, {pipeline_mode = #tpu.pipeline_mode<synchronous>, transform_indices = @transform_5, window_bounds = array<i64: 32, 64>}, {pipeline_mode = #tpu.pipeline_mode<synchronous>, transform_indices = @transform_6, window_bounds = array<i64: 1, 64>}, {pipeline_mode = #tpu.pipeline_mode<synchronous>, transform_indices = @transform_7, window_bounds = array<i64: 32, 32>}, {pipeline_mode = #tpu.pipeline_mode<synchronous>, transform_indices = @transform_8, window_bounds = array<i64: 1, 32>}, {pipeline_mode = #tpu.pipeline_mode<synchronous>, transform_indices = @transform_9, window_bounds = array<i64: 1, 32>}, {pipeline_mode = #tpu.pipeline_mode<synchronous>, transform_indices = @transform_10, window_bounds = array<i64: 1, 32>}, {transform_indices = @transform_11, window_bounds = array<i64: 1, 8, 32>}]} {
    %c0 = arith.constant 0 : index
    %c0_0 = arith.constant 0 : index
    %c0_1 = arith.constant 0 : index
    %0 = vector.load %arg2[%c0, %c0_0, %c0_1] : memref<1x8x32xf32, #tpu.memory_space<vmem>>, vector<1x8x32xf32>
    %1 = vector.shape_cast %0 : vector<1x8x32xf32> to vector<8x32xf32>
    %c0_2 = arith.constant 0 : index
    %c0_3 = arith.constant 0 : index
    %c0_4 = arith.constant 0 : index
    %2 = vector.load %arg3[%c0_2, %c0_3, %c0_4] : memref<1x8x32xf32, #tpu.memory_space<vmem>>, vector<1x8x32xf32>
    %3 = vector.shape_cast %2 : vector<1x8x32xf32> to vector<8x32xf32>
    %c0_5 = arith.constant 0 : index
    %c0_6 = arith.constant 0 : index
    %c0_7 = arith.constant 0 : index
    %4 = vector.load %arg4[%c0_5, %c0_6, %c0_7] : memref<1x1x8xbf16, #tpu.memory_space<vmem>>, vector<1x1x8xbf16>
    %5 = vector.shape_cast %4 : vector<1x1x8xbf16> to vector<1x8xbf16>
    %6 = arith.extf %5 : vector<1x8xbf16> to vector<1x8xf32>
    %7 = arith.truncf %1 : vector<8x32xf32> to vector<8x32xbf16>
    %8 = arith.truncf %3 : vector<8x32xf32> to vector<8x32xbf16>
    %c0_8 = arith.constant 0 : index
    %c0_9 = arith.constant 0 : index
    %9 = vector.load %arg5[%c0_8, %c0_9] : memref<32x32xbf16, #tpu.memory_space<vmem>>, vector<32x32xbf16>
    %cst = arith.constant dense<0.000000e+00> : vector<8x32xf32>
    %10 = tpu.matmul %7, %9, %cst {dimension_numbers = #tpu.dot_dimension_numbers<[1], [0], [0], [1], [0, 0, 1, 1], [], []>} : vector<8x32xbf16>, vector<32x32xbf16>, vector<8x32xf32> -> vector<8x32xf32>
    %c0_10 = arith.constant 0 : index
    %c0_11 = arith.constant 0 : index
    %11 = vector.load %arg6[%c0_10, %c0_11] : memref<1x32xf32, #tpu.memory_space<vmem>>, vector<1x32xf32>
    %12 = vector.broadcast %11 : vector<1x32xf32> to vector<8x32xf32>
    %13 = arith.addf %10, %12 : vector<8x32xf32>
    %cst_12 = arith.constant 0.353553385 : f32
    %14 = vector.broadcast %cst_12 : f32 to vector<8x32xf32>
    %15 = arith.mulf %13, %14 : vector<8x32xf32>
    %c0_13 = arith.constant 0 : index
    %c0_14 = arith.constant 0 : index
    %16 = vector.load %arg7[%c0_13, %c0_14] : memref<32x64xbf16, #tpu.memory_space<vmem>>, vector<32x64xbf16>
    %cst_15 = arith.constant dense<0.000000e+00> : vector<8x64xf32>
    %17 = tpu.matmul %8, %16, %cst_15 {dimension_numbers = #tpu.dot_dimension_numbers<[1], [0], [0], [1], [0, 0, 1, 1], [], []>} : vector<8x32xbf16>, vector<32x64xbf16>, vector<8x64xf32> -> vector<8x64xf32>
    %c0_16 = arith.constant 0 : index
    %c0_17 = arith.constant 0 : index
    %18 = vector.load %arg8[%c0_16, %c0_17] : memref<1x64xf32, #tpu.memory_space<vmem>>, vector<1x64xf32>
    %19 = vector.broadcast %18 : vector<1x64xf32> to vector<8x64xf32>
    %20 = arith.addf %17, %19 : vector<8x64xf32>
    %21 = vector.extract_strided_slice %20 {offsets = [0, 0], sizes = [8, 32], strides = [1, 1]} : vector<8x64xf32> to vector<8x32xf32>
    %22 = vector.extract_strided_slice %20 {offsets = [0, 32], sizes = [8, 32], strides = [1, 1]} : vector<8x64xf32> to vector<8x32xf32>
    %23 = vector.extract_strided_slice %15 {offsets = [0, 0], sizes = [8, 8], strides = [1, 1]} : vector<8x32xf32> to vector<8x8xf32>
    %24 = arith.truncf %23 : vector<8x8xf32> to vector<8x8xbf16>
    %25 = vector.extract_strided_slice %21 {offsets = [0, 0], sizes = [8, 8], strides = [1, 1]} : vector<8x32xf32> to vector<8x8xf32>
    %26 = arith.truncf %25 : vector<8x8xf32> to vector<8x8xbf16>
    %27 = vector.extract_strided_slice %22 {offsets = [0, 0], sizes = [8, 8], strides = [1, 1]} : vector<8x32xf32> to vector<8x8xf32>
    %28 = arith.truncf %27 : vector<8x8xf32> to vector<8x8xbf16>
    %cst_18 = arith.constant dense<0.000000e+00> : vector<8x8xf32>
    %29 = tpu.matmul %24, %26, %cst_18 {dimension_numbers = #tpu.dot_dimension_numbers<[1], [1], [0], [0], [0, 0, 1, 0], [], []>} : vector<8x8xbf16>, vector<8x8xbf16>, vector<8x8xf32> -> vector<8x8xf32>
    %30 = vector.broadcast %6 : vector<1x8xf32> to vector<8x8xf32>
    %31 = arith.addf %29, %30 : vector<8x8xf32>
    %cst_19 = arith.constant dense<0xFF800000> : vector<8xf32>
    %32 = vector.multi_reduction <maximumf>, %31, %cst_19 [1] : vector<8x8xf32> to vector<8xf32>
    %33 = vector.shape_cast %32 : vector<8xf32> to vector<8x1xf32>
    %34 = vector.broadcast %33 : vector<8x1xf32> to vector<8x8xf32>
    %35 = arith.subf %31, %34 : vector<8x8xf32>
    %36 = math.exp %35 : vector<8x8xf32>
    %cst_20 = arith.constant dense<0.000000e+00> : vector<8xf32>
    %37 = vector.multi_reduction <add>, %36, %cst_20 [1] : vector<8x8xf32> to vector<8xf32>
    %38 = vector.shape_cast %37 : vector<8xf32> to vector<8x1xf32>
    %39 = tpu.reciprocal %38 {approx = true} : vector<8x1xf32> -> vector<8x1xf32>
    %40 = vector.broadcast %39 : vector<8x1xf32> to vector<8x8xf32>
    %41 = arith.mulf %36, %40 : vector<8x8xf32>
    %42 = arith.truncf %41 : vector<8x8xf32> to vector<8x8xbf16>
    %cst_21 = arith.constant dense<0.000000e+00> : vector<8x8xf32>
    %43 = tpu.matmul %42, %28, %cst_21 {dimension_numbers = #tpu.dot_dimension_numbers<[1], [0], [0], [1], [0, 0, 1, 1], [], []>} : vector<8x8xbf16>, vector<8x8xbf16>, vector<8x8xf32> -> vector<8x8xf32>
    %c0_22 = arith.constant 0 : index
    %c0_23 = arith.constant 0 : index
    %44 = vector.load %arg14[%c0_22, %c0_23] : memref<8x32xf32, #tpu.memory_space<vmem>>, vector<8x8xf32>
    tpu.vector_store %arg14[%c0_22, %c0_23], %43 {strides = array<i32>} : memref<8x32xf32, #tpu.memory_space<vmem>>, vector<8x8xf32>,
    %45 = vector.extract_strided_slice %15 {offsets = [0, 8], sizes = [8, 8], strides = [1, 1]} : vector<8x32xf32> to vector<8x8xf32>
    %46 = arith.truncf %45 : vector<8x8xf32> to vector<8x8xbf16>
    %47 = vector.extract_strided_slice %21 {offsets = [0, 8], sizes = [8, 8], strides = [1, 1]} : vector<8x32xf32> to vector<8x8xf32>
    %48 = arith.truncf %47 : vector<8x8xf32> to vector<8x8xbf16>
    %49 = vector.extract_strided_slice %22 {offsets = [0, 8], sizes = [8, 8], strides = [1, 1]} : vector<8x32xf32> to vector<8x8xf32>
    %50 = arith.truncf %49 : vector<8x8xf32> to vector<8x8xbf16>
    %cst_24 = arith.constant dense<0.000000e+00> : vector<8x8xf32>
    %51 = tpu.matmul %46, %48, %cst_24 {dimension_numbers = #tpu.dot_dimension_numbers<[1], [1], [0], [0], [0, 0, 1, 0], [], []>} : vector<8x8xbf16>, vector<8x8xbf16>, vector<8x8xf32> -> vector<8x8xf32>
    %52 = vector.broadcast %6 : vector<1x8xf32> to vector<8x8xf32>
    %53 = arith.addf %51, %52 : vector<8x8xf32>
    %cst_25 = arith.constant dense<0xFF800000> : vector<8xf32>
    %54 = vector.multi_reduction <maximumf>, %53, %cst_25 [1] : vector<8x8xf32> to vector<8xf32>
    %55 = vector.shape_cast %54 : vector<8xf32> to vector<8x1xf32>
    %56 = vector.broadcast %55 : vector<8x1xf32> to vector<8x8xf32>
    %57 = arith.subf %53, %56 : vector<8x8xf32>
    %58 = math.exp %57 : vector<8x8xf32>
    %cst_26 = arith.constant dense<0.000000e+00> : vector<8xf32>
    %59 = vector.multi_reduction <add>, %58, %cst_26 [1] : vector<8x8xf32> to vector<8xf32>
    %60 = vector.shape_cast %59 : vector<8xf32> to vector<8x1xf32>
    %61 = tpu.reciprocal %60 {approx = true} : vector<8x1xf32> -> vector<8x1xf32>
    %62 = vector.broadcast %61 : vector<8x1xf32> to vector<8x8xf32>
    %63 = arith.mulf %58, %62 : vector<8x8xf32>
    %64 = arith.truncf %63 : vector<8x8xf32> to vector<8x8xbf16>
    %cst_27 = arith.constant dense<0.000000e+00> : vector<8x8xf32>
    %65 = tpu.matmul %64, %50, %cst_27 {dimension_numbers = #tpu.dot_dimension_numbers<[1], [0], [0], [1], [0, 0, 1, 1], [], []>} : vector<8x8xbf16>, vector<8x8xbf16>, vector<8x8xf32> -> vector<8x8xf32>
    %c0_28 = arith.constant 0 : index
    %c8 = arith.constant 8 : index
    %66 = vector.load %arg14[%c0_28, %c8] : memref<8x32xf32, #tpu.memory_space<vmem>>, vector<8x8xf32>
    tpu.vector_store %arg14[%c0_28, %c8], %65 {strides = array<i32>} : memref<8x32xf32, #tpu.memory_space<vmem>>, vector<8x8xf32>,
    %67 = vector.extract_strided_slice %15 {offsets = [0, 16], sizes = [8, 8], strides = [1, 1]} : vector<8x32xf32> to vector<8x8xf32>
    %68 = arith.truncf %67 : vector<8x8xf32> to vector<8x8xbf16>
    %69 = vector.extract_strided_slice %21 {offsets = [0, 16], sizes = [8, 8], strides = [1, 1]} : vector<8x32xf32> to vector<8x8xf32>
    %70 = arith.truncf %69 : vector<8x8xf32> to vector<8x8xbf16>
    %71 = vector.extract_strided_slice %22 {offsets = [0, 16], sizes = [8, 8], strides = [1, 1]} : vector<8x32xf32> to vector<8x8xf32>
    %72 = arith.truncf %71 : vector<8x8xf32> to vector<8x8xbf16>
    %cst_29 = arith.constant dense<0.000000e+00> : vector<8x8xf32>
    %73 = tpu.matmul %68, %70, %cst_29 {dimension_numbers = #tpu.dot_dimension_numbers<[1], [1], [0], [0], [0, 0, 1, 0], [], []>} : vector<8x8xbf16>, vector<8x8xbf16>, vector<8x8xf32> -> vector<8x8xf32>
    %74 = vector.broadcast %6 : vector<1x8xf32> to vector<8x8xf32>
    %75 = arith.addf %73, %74 : vector<8x8xf32>
    %cst_30 = arith.constant dense<0xFF800000> : vector<8xf32>
    %76 = vector.multi_reduction <maximumf>, %75, %cst_30 [1] : vector<8x8xf32> to vector<8xf32>
    %77 = vector.shape_cast %76 : vector<8xf32> to vector<8x1xf32>
    %78 = vector.broadcast %77 : vector<8x1xf32> to vector<8x8xf32>
    %79 = arith.subf %75, %78 : vector<8x8xf32>
    %80 = math.exp %79 : vector<8x8xf32>
    %cst_31 = arith.constant dense<0.000000e+00> : vector<8xf32>
    %81 = vector.multi_reduction <add>, %80, %cst_31 [1] : vector<8x8xf32> to vector<8xf32>
    %82 = vector.shape_cast %81 : vector<8xf32> to vector<8x1xf32>
    %83 = tpu.reciprocal %82 {approx = true} : vector<8x1xf32> -> vector<8x1xf32>
    %84 = vector.broadcast %83 : vector<8x1xf32> to vector<8x8xf32>
    %85 = arith.mulf %80, %84 : vector<8x8xf32>
    %86 = arith.truncf %85 : vector<8x8xf32> to vector<8x8xbf16>
    %cst_32 = arith.constant dense<0.000000e+00> : vector<8x8xf32>
    %87 = tpu.matmul %86, %72, %cst_32 {dimension_numbers = #tpu.dot_dimension_numbers<[1], [0], [0], [1], [0, 0, 1, 1], [], []>} : vector<8x8xbf16>, vector<8x8xbf16>, vector<8x8xf32> -> vector<8x8xf32>
    %c0_33 = arith.constant 0 : index
    %c16 = arith.constant 16 : index
    %88 = vector.load %arg14[%c0_33, %c16] : memref<8x32xf32, #tpu.memory_space<vmem>>, vector<8x8xf32>
    tpu.vector_store %arg14[%c0_33, %c16], %87 {strides = array<i32>} : memref<8x32xf32, #tpu.memory_space<vmem>>, vector<8x8xf32>,
    %89 = vector.extract_strided_slice %15 {offsets = [0, 24], sizes = [8, 8], strides = [1, 1]} : vector<8x32xf32> to vector<8x8xf32>
    %90 = arith.truncf %89 : vector<8x8xf32> to vector<8x8xbf16>
    %91 = vector.extract_strided_slice %21 {offsets = [0, 24], sizes = [8, 8], strides = [1, 1]} : vector<8x32xf32> to vector<8x8xf32>
    %92 = arith.truncf %91 : vector<8x8xf32> to vector<8x8xbf16>
    %93 = vector.extract_strided_slice %22 {offsets = [0, 24], sizes = [8, 8], strides = [1, 1]} : vector<8x32xf32> to vector<8x8xf32>
    %94 = arith.truncf %93 : vector<8x8xf32> to vector<8x8xbf16>
    %cst_34 = arith.constant dense<0.000000e+00> : vector<8x8xf32>
    %95 = tpu.matmul %90, %92, %cst_34 {dimension_numbers = #tpu.dot_dimension_numbers<[1], [1], [0], [0], [0, 0, 1, 0], [], []>} : vector<8x8xbf16>, vector<8x8xbf16>, vector<8x8xf32> -> vector<8x8xf32>
    %96 = vector.broadcast %6 : vector<1x8xf32> to vector<8x8xf32>
    %97 = arith.addf %95, %96 : vector<8x8xf32>
    %cst_35 = arith.constant dense<0xFF800000> : vector<8xf32>
    %98 = vector.multi_reduction <maximumf>, %97, %cst_35 [1] : vector<8x8xf32> to vector<8xf32>
    %99 = vector.shape_cast %98 : vector<8xf32> to vector<8x1xf32>
    %100 = vector.broadcast %99 : vector<8x1xf32> to vector<8x8xf32>
    %101 = arith.subf %97, %100 : vector<8x8xf32>
    %102 = math.exp %101 : vector<8x8xf32>
    %cst_36 = arith.constant dense<0.000000e+00> : vector<8xf32>
    %103 = vector.multi_reduction <add>, %102, %cst_36 [1] : vector<8x8xf32> to vector<8xf32>
    %104 = vector.shape_cast %103 : vector<8xf32> to vector<8x1xf32>
    %105 = tpu.reciprocal %104 {approx = true} : vector<8x1xf32> -> vector<8x1xf32>
    %106 = vector.broadcast %105 : vector<8x1xf32> to vector<8x8xf32>
    %107 = arith.mulf %102, %106 : vector<8x8xf32>
    %108 = arith.truncf %107 : vector<8x8xf32> to vector<8x8xbf16>
    %cst_37 = arith.constant dense<0.000000e+00> : vector<8x8xf32>
    %109 = tpu.matmul %108, %94, %cst_37 {dimension_numbers = #tpu.dot_dimension_numbers<[1], [0], [0], [1], [0, 0, 1, 1], [], []>} : vector<8x8xbf16>, vector<8x8xbf16>, vector<8x8xf32> -> vector<8x8xf32>
    %c0_38 = arith.constant 0 : index
    %c24 = arith.constant 24 : index
    %110 = vector.load %arg14[%c0_38, %c24] : memref<8x32xf32, #tpu.memory_space<vmem>>, vector<8x8xf32>
    tpu.vector_store %arg14[%c0_38, %c24], %109 {strides = array<i32>} : memref<8x32xf32, #tpu.memory_space<vmem>>, vector<8x8xf32>,
    %c0_39 = arith.constant 0 : index
    %c0_40 = arith.constant 0 : index
    %111 = vector.load %arg14[%c0_39, %c0_40] : memref<8x32xf32, #tpu.memory_space<vmem>>, vector<8x32xf32>
    %112 = arith.truncf %111 : vector<8x32xf32> to vector<8x32xbf16>
    %c0_41 = arith.constant 0 : index
    %c0_42 = arith.constant 0 : index
    %113 = vector.load %arg9[%c0_41, %c0_42] : memref<32x32xbf16, #tpu.memory_space<vmem>>, vector<32x32xbf16>
    %cst_43 = arith.constant dense<0.000000e+00> : vector<8x32xf32>
    %114 = tpu.matmul %112, %113, %cst_43 {dimension_numbers = #tpu.dot_dimension_numbers<[1], [0], [0], [1], [0, 0, 1, 1], [], []>} : vector<8x32xbf16>, vector<32x32xbf16>, vector<8x32xf32> -> vector<8x32xf32>
    %c0_44 = arith.constant 0 : index
    %c0_45 = arith.constant 0 : index
    %115 = vector.load %arg10[%c0_44, %c0_45] : memref<1x32xf32, #tpu.memory_space<vmem>>, vector<1x32xf32>
    %116 = vector.broadcast %115 : vector<1x32xf32> to vector<8x32xf32>
    %117 = arith.addf %114, %116 : vector<8x32xf32>
    %118 = arith.addf %1, %117 : vector<8x32xf32>
    %cst_46 = arith.constant dense<0.000000e+00> : vector<8xf32>
    %119 = vector.multi_reduction <add>, %118, %cst_46 [1] : vector<8x32xf32> to vector<8xf32>
    %120 = vector.shape_cast %119 : vector<8xf32> to vector<8x1xf32>
    %cst_47 = arith.constant 3.200000e+01 : f32
    %121 = vector.broadcast %cst_47 : f32 to vector<8x1xf32>
    %122 = arith.divf %120, %121 : vector<8x1xf32>
    %123 = vector.broadcast %122 : vector<8x1xf32> to vector<8x32xf32>
    %124 = arith.subf %118, %123 : vector<8x32xf32>
    %125 = vector.broadcast %122 : vector<8x1xf32> to vector<8x32xf32>
    %126 = arith.subf %118, %125 : vector<8x32xf32>
    %127 = arith.mulf %124, %126 : vector<8x32xf32>
    %cst_48 = arith.constant dense<0.000000e+00> : vector<8xf32>
    %128 = vector.multi_reduction <add>, %127, %cst_48 [1] : vector<8x32xf32> to vector<8xf32>
    %129 = vector.shape_cast %128 : vector<8xf32> to vector<8x1xf32>
    %cst_49 = arith.constant 3.200000e+01 : f32
    %130 = vector.broadcast %cst_49 : f32 to vector<8x1xf32>
    %131 = arith.divf %129, %130 : vector<8x1xf32>
    %132 = vector.broadcast %122 : vector<8x1xf32> to vector<8x32xf32>
    %133 = arith.subf %118, %132 : vector<8x32xf32>
    %cst_50 = arith.constant 9.99999974E-6 : f32
    %134 = vector.broadcast %cst_50 : f32 to vector<8x1xf32>
    %135 = arith.addf %131, %134 : vector<8x1xf32>
    %136 = math.rsqrt %135 : vector<8x1xf32>
    %137 = vector.broadcast %136 : vector<8x1xf32> to vector<8x32xf32>
    %138 = arith.mulf %133, %137 : vector<8x32xf32>
    %c0_51 = arith.constant 0 : index
    %c0_52 = arith.constant 0 : index
    %139 = vector.load %arg11[%c0_51, %c0_52] : memref<1x32xf32, #tpu.memory_space<vmem>>, vector<1x32xf32>
    %140 = vector.broadcast %139 : vector<1x32xf32> to vector<8x32xf32>
    %141 = arith.mulf %138, %140 : vector<8x32xf32>
    %c0_53 = arith.constant 0 : index
    %c0_54 = arith.constant 0 : index
    %142 = vector.load %arg12[%c0_53, %c0_54] : memref<1x32xf32, #tpu.memory_space<vmem>>, vector<1x32xf32>
    %143 = vector.broadcast %142 : vector<1x32xf32> to vector<8x32xf32>
    %144 = arith.addf %141, %143 : vector<8x32xf32>
    %c0_55 = arith.constant 0 : index
    %c0_56 = arith.constant 0 : index
    %c0_57 = arith.constant 0 : index
    %145 = vector.load %arg13[%c0_55, %c0_56, %c0_57] : memref<1x8x32xf32, #tpu.memory_space<vmem>>, vector<1x8x32xf32>
    %146 = vector.shape_cast %145 : vector<1x8x32xf32> to vector<8x32xf32>
    %147 = vector.shape_cast %144 : vector<8x32xf32> to vector<1x8x32xf32>
    tpu.vector_store %arg13[%c0_55, %c0_56, %c0_57], %147 {strides = array<i32>} : memref<1x8x32xf32, #tpu.memory_space<vmem>>, vector<1x8x32xf32>,
    return
  }
  func.func @transform_0(%arg0: i32, %arg1: i32) -> (i32, i32, i32) {
    %c0_i32 = arith.constant 0 : i32
    %c0_i32_0 = arith.constant 0 : i32
    return %arg0, %arg1, %c0_i32 : i32, i32, i32
  }
  func.func @transform_1(%arg0: i32, %arg1: i32) -> (i32, i32, i32) {
    %c0_i32 = arith.constant 0 : i32
    %c0_i32_0 = arith.constant 0 : i32
    %c0_i32_1 = arith.constant 0 : i32
    return %arg0, %c0_i32, %c0_i32_0 : i32, i32, i32
  }
  func.func @transform_2(%arg0: i32, %arg1: i32) -> (i32, i32, i32) {
    %c0_i32 = arith.constant 0 : i32
    %c0_i32_0 = arith.constant 0 : i32
    %c0_i32_1 = arith.constant 0 : i32
    return %arg0, %c0_i32, %c0_i32_0 : i32, i32, i32
  }
  func.func @transform_3(%arg0: i32, %arg1: i32) -> (i32, i32) {
    %c0_i32 = arith.constant 0 : i32
    %c0_i32_0 = arith.constant 0 : i32
    %c0_i32_1 = arith.constant 0 : i32
    return %c0_i32, %c0_i32_0 : i32, i32
  }
  func.func @transform_4(%arg0: i32, %arg1: i32) -> (i32, i32) {
    %c0_i32 = arith.constant 0 : i32
    %c0_i32_0 = arith.constant 0 : i32
    %c0_i32_1 = arith.constant 0 : i32
    return %c0_i32, %c0_i32_0 : i32, i32
  }
  func.func @transform_5(%arg0: i32, %arg1: i32) -> (i32, i32) {
    %c0_i32 = arith.constant 0 : i32
    %c0_i32_0 = arith.constant 0 : i32
    %c0_i32_1 = arith.constant 0 : i32
    return %c0_i32, %c0_i32_0 : i32, i32
  }
  func.func @transform_6(%arg0: i32, %arg1: i32) -> (i32, i32) {
    %c0_i32 = arith.constant 0 : i32
    %c0_i32_0 = arith.constant 0 : i32
    %c0_i32_1 = arith.constant 0 : i32
    return %c0_i32, %c0_i32_0 : i32, i32
  }
  func.func @transform_7(%arg0: i32, %arg1: i32) -> (i32, i32) {
    %c0_i32 = arith.constant 0 : i32
    %c0_i32_0 = arith.constant 0 : i32
    %c0_i32_1 = arith.constant 0 : i32
    return %c0_i32, %c0_i32_0 : i32, i32
  }
  func.func @transform_8(%arg0: i32, %arg1: i32) -> (i32, i32) {
    %c0_i32 = arith.constant 0 : i32
    %c0_i32_0 = arith.constant 0 : i32
    %c0_i32_1 = arith.constant 0 : i32
    return %c0_i32, %c0_i32_0 : i32, i32
  }
  func.func @transform_9(%arg0: i32, %arg1: i32) -> (i32, i32) {
    %c0_i32 = arith.constant 0 : i32
    %c0_i32_0 = arith.constant 0 : i32
    %c0_i32_1 = arith.constant 0 : i32
    return %c0_i32, %c0_i32_0 : i32, i32
  }
  func.func @transform_10(%arg0: i32, %arg1: i32) -> (i32, i32) {
    %c0_i32 = arith.constant 0 : i32
    %c0_i32_0 = arith.constant 0 : i32
    %c0_i32_1 = arith.constant 0 : i32
    return %c0_i32, %c0_i32_0 : i32, i32
  }
  func.func @transform_11(%arg0: i32, %arg1: i32) -> (i32, i32, i32) {
    %c0_i32 = arith.constant 0 : i32
    %c0_i32_0 = arith.constant 0 : i32
    return %arg0, %arg1, %c0_i32 : i32, i32, i32
  }
}

module attributes {stable_mosaic.version = 11 : i64} {
  func.func @_matmul_bias_kernel(%arg0: i32, %arg1: i32, %arg2: i32, %arg3: memref<16x32xf32, #tpu.memory_space<vmem>>, %arg4: memref<32x128xbf16, #tpu.memory_space<vmem>>, %arg5: memref<1x128xf32, #tpu.memory_space<vmem>>, %arg6: memref<16x128xf32, #tpu.memory_space<vmem>>, %arg7: memref<16x128xf32, #tpu.memory_space<vmem>>) attributes {dimension_semantics = [#tpu.dimension_semantics<parallel>, #tpu.dimension_semantics<parallel>, #tpu.dimension_semantics<arbitrary>], iteration_bounds = array<i64: 1, 1, 1>, scalar_prefetch = 0 : i64, scratch_operands = 1 : i64, tpu.core_type = #tpu.core_type<tc>, window_params = [{transform_indices = @transform_0, window_bounds = array<i64: 16, 32>}, {transform_indices = @transform_1, window_bounds = array<i64: 32, 128>}, {transform_indices = @transform_2, window_bounds = array<i64: 1, 128>}, {transform_indices = @transform_3, window_bounds = array<i64: 16, 128>}]} {
    %c0_i32 = arith.constant 0 : i32
    %0 = arith.cmpi eq, %arg2, %c0_i32 : i32
    %1 = arith.extui %0 : i1 to i32
    %c0_i32_0 = arith.constant 0 : i32
    %2 = arith.cmpi ne, %1, %c0_i32_0 : i32
    scf.if %2 {
      %cst_10 = arith.constant 0.000000e+00 : f32
      %13 = vector.broadcast %cst_10 : f32 to vector<16x128xf32>
      %c0_11 = arith.constant 0 : index
      %c0_12 = arith.constant 0 : index
      %14 = vector.load %arg7[%c0_11, %c0_12] : memref<16x128xf32, #tpu.memory_space<vmem>>, vector<16x128xf32>
      tpu.vector_store %arg7[%c0_11, %c0_12], %13 {strides = array<i32>} : memref<16x128xf32, #tpu.memory_space<vmem>>, vector<16x128xf32>,
    } else {
    }
    %c0 = arith.constant 0 : index
    %c0_1 = arith.constant 0 : index
    %3 = vector.load %arg7[%c0, %c0_1] : memref<16x128xf32, #tpu.memory_space<vmem>>, vector<16x128xf32>
    %c0_2 = arith.constant 0 : index
    %c0_3 = arith.constant 0 : index
    %4 = vector.load %arg3[%c0_2, %c0_3] : memref<16x32xf32, #tpu.memory_space<vmem>>, vector<16x32xf32>
    %5 = arith.truncf %4 : vector<16x32xf32> to vector<16x32xbf16>
    %c0_4 = arith.constant 0 : index
    %c0_5 = arith.constant 0 : index
    %6 = vector.load %arg4[%c0_4, %c0_5] : memref<32x128xbf16, #tpu.memory_space<vmem>>, vector<32x128xbf16>
    %cst = arith.constant dense<0.000000e+00> : vector<16x128xf32>
    %7 = tpu.matmul %5, %6, %cst {dimension_numbers = #tpu.dot_dimension_numbers<[1], [0], [0], [1], [0, 0, 1, 1], [], []>} : vector<16x32xbf16>, vector<32x128xbf16>, vector<16x128xf32> -> vector<16x128xf32>
    %8 = arith.addf %3, %7 : vector<16x128xf32>
    %c0_6 = arith.constant 0 : index
    %c0_7 = arith.constant 0 : index
    %9 = vector.load %arg7[%c0_6, %c0_7] : memref<16x128xf32, #tpu.memory_space<vmem>>, vector<16x128xf32>
    tpu.vector_store %arg7[%c0_6, %c0_7], %8 {strides = array<i32>} : memref<16x128xf32, #tpu.memory_space<vmem>>, vector<16x128xf32>,
    %c0_i32_8 = arith.constant 0 : i32
    %10 = arith.cmpi eq, %arg2, %c0_i32_8 : i32
    %11 = arith.extui %10 : i1 to i32
    %c0_i32_9 = arith.constant 0 : i32
    %12 = arith.cmpi ne, %11, %c0_i32_9 : i32
    scf.if %12 {
      %c0_10 = arith.constant 0 : index
      %c0_11 = arith.constant 0 : index
      %13 = vector.load %arg7[%c0_10, %c0_11] : memref<16x128xf32, #tpu.memory_space<vmem>>, vector<16x128xf32>
      %c0_12 = arith.constant 0 : index
      %c0_13 = arith.constant 0 : index
      %14 = vector.load %arg5[%c0_12, %c0_13] : memref<1x128xf32, #tpu.memory_space<vmem>>, vector<1x128xf32>
      %15 = vector.broadcast %14 : vector<1x128xf32> to vector<16x128xf32>
      %16 = arith.addf %13, %15 : vector<16x128xf32>
      %c0_14 = arith.constant 0 : index
      %c0_15 = arith.constant 0 : index
      %17 = vector.load %arg6[%c0_14, %c0_15] : memref<16x128xf32, #tpu.memory_space<vmem>>, vector<16x128xf32>
      tpu.vector_store %arg6[%c0_14, %c0_15], %16 {strides = array<i32>} : memref<16x128xf32, #tpu.memory_space<vmem>>, vector<16x128xf32>,
    } else {
    }
    return
  }
  func.func @transform_0(%arg0: i32, %arg1: i32, %arg2: i32) -> (i32, i32) {
    %c0_i32 = arith.constant 0 : i32
    return %arg0, %arg2 : i32, i32
  }
  func.func @transform_1(%arg0: i32, %arg1: i32, %arg2: i32) -> (i32, i32) {
    %c0_i32 = arith.constant 0 : i32
    return %arg2, %arg1 : i32, i32
  }
  func.func @transform_2(%arg0: i32, %arg1: i32, %arg2: i32) -> (i32, i32) {
    %c0_i32 = arith.constant 0 : i32
    %c0_i32_0 = arith.constant 0 : i32
    return %c0_i32, %arg1 : i32, i32
  }
  func.func @transform_3(%arg0: i32, %arg1: i32, %arg2: i32) -> (i32, i32) {
    %c0_i32 = arith.constant 0 : i32
    return %arg0, %arg1 : i32, i32
  }
}

</mosaic_0001>

<bundles_post_ra>
// kernel: transformer_forward.21
= control target key start
LH: loop header
LB: loop body
LE: loop exit
PB: predicated region body
PF: predicated region fallthrough
CT: control target
= control target key end

     0   :  { %v130_v0 = vmov 0.0   ;;  %vm131_vm0 = vmmov 0   ;;  %vm42_vm1 = vcmask 261120   ;;  %s173_s1 = inlined_call_operand.vmem [shape: bf16[32,128], index: 1, kind: input, shape index: {}]   ;;  %s174_s0 = inlined_call_operand.vmem [shape: f32[16,32], index: 0, kind: input, shape index: {}]   ;;  %s175_s2 = inlined_call_operand.vmem [shape: f32[1,128], index: 2, kind: input, shape index: {}]   ;;  %s176_s3 = inlined_call_operand.vmem [shape: f32[16,128], index: 3, kind: output, shape index: {}]  }
   0x1   :  { %118 = vmatprep.subr.bf16.mxu0 %v130_v0  ;;  %v128_v1 = vld [vmem:[%s173_s1 + $0x8] sm:$0xff]   ;;  %122 = vmatprep.mubr.msk.bf16.mxu0 %vm131_vm0, %v130_v0  ;;  %v129_v2 = vld [vmem:[%s173_s1] sm:$0xff]  }
   0x2   :  { %119 = vmatpush3.bf16.msra.mxu0 %v128_v1  ;;  %v23_v3 = vld [vmem:[%s174_s0] sm:$0xff]  ;;  %v24_v4 = vld [vmem:[%s174_s0 + $0x8] sm:$0xff] }
   0x3   :  { %120 = vmatprep.subr.bf16.mxu0 %v130_v0  ;;  %v25_v5 = vpack.c.bf16 %v24_v4, %v23_v3  ;;  %v114_v6 = vld [vmem:[%s175_s2] ss:$0 sm:$0xff] }
   0x6   :  { %121 = vmatpush3.bf16.msra.mxu0 %v129_v2 }
   0x9   :  { %123 = vmatmul.mubr.msk.bf16.vlgmr.msra.gmra.mxu0 %vm42_vm1, %v25_v5 }
  0xc9   :  { %v80_v7 = vpop.f32.mrf.mxu0 }
  0xca   :  { %v103_v8 = vadd.f32 %v114_v6, %v80_v7 }
  0xcb   :  { %v124_v9 = vpop.f32.mrf.mxu0 }
  0xcc   :  { %105 = vst [vmem:[%s176_s3] sm:$0xff] %v103_v8 }
  0xcd   :  { %v83_v10 = vpop.f32.mrf.mxu0 }
  0xce   :  { %v104_v11 = vadd.f32 %v114_v6, %v83_v10 }
  0xcf   :  { %v125_v12 = vpop.f32.mrf.mxu0 }
  0xd0   :  { %106 = vst [vmem:[%s176_s3 + $0x8] sm:$0xff] %v104_v11 }

// kernel: transformer_forward.12
= control target key start
LH: loop header
LB: loop body
LE: loop exit
PB: predicated region body
PF: predicated region fallthrough
CT: control target
= control target key end

     0   :  { %vm31_vm0 = vcmask 261120   ;;  %v312_v0 = vmov 0.0   ;;  %vm313_vm1 = vmmov 0   ;;  %vm142_vm2 = vcmask 523264   ;;  %s407_s1 = inlined_call_operand.vmem [shape: bf16[32,64], index: 1, kind: input, shape index: {}]   ;;  %s408_s0 = inlined_call_operand.vmem [shape: f32[16,32], index: 0, kind: input, shape index: {}]   ;;  %s409_s3 = inlined_call_operand.vmem [shape: bf16[64,32], index: 3, kind: input, shape index: {}]   ;;  %s410_s2 = inlined_call_operand.vmem [shape: f32[1,64], index: 2, kind: input, shape index: {}]   ;;  %s411_s4 = inlined_call_operand.vmem [shape: f32[1,32], index: 4, kind: input, shape index: {}]   ;;  %s412_s5 = inlined_call_operand.vmem [shape: f32[1,32], index: 5, kind: input, shape index: {}]   ;;  %s413_s6 = inlined_call_operand.vmem [shape: f32[1,32], index: 6, kind: input, shape index: {}]   ;;  %s414_s7 = inlined_call_operand.vmem [shape: f32[16,32], index: 7, kind: output, shape index: {}]  }
   0x1   :  { %280 = vmatprep.subr.bf16.mxu0 %v312_v0  ;;  %v302_v1 = vld [vmem:[%s407_s1 + $0x8] sm:$0xff]   ;;  %284 = vmatprep.mubr.msk.bf16.mxu0 %vm313_vm1, %v312_v0  ;;  %32 = vst.msk [vmem:[#allocation2] sm:$0xff] %vm31_vm0, %v312_v0  ;;  %33 = vst.msk [vmem:[#allocation2 + $0x8] sm:$0xff] %vm31_vm0, %v312_v0  ;;  %v303_v2 = vld [vmem:[%s407_s1] sm:$0xff]  }
   0x2   :  { %288 = vmatprep.subr.bf16.mxu1 %v312_v0  ;;  %296 = vmatprep.mubr.msk.bf16.mxu1 %vm313_vm1, %v312_v0  ;;  %v34_v3 = vld [vmem:[%s408_s0] sm:$0xff]  ;;  %v35_v4 = vld [vmem:[%s408_s0 + $0x8] sm:$0xff]  ;;  %v304_v5 = vld [vmem:[%s409_s3 + $0x18] sm:$0xff]  }
   0x3   :  { %281 = vmatpush3.bf16.msra.mxu0 %v302_v1  ;;  %v36_v6 = vpack.c.bf16 %v35_v4, %v34_v3  ;;  %289 = vmatpush3.bf16.msra.mxu1 %v304_v5  ;;  %v305_v7 = vld [vmem:[%s409_s3 + $0x10] sm:$0xff]   ;;  %v306_v8 = vld [vmem:[%s409_s3 + $0x8] sm:$0xff]   ;;  %v307_v9 = vld [vmem:[%s409_s3] sm:$0xff]  }
   0x4   :  { %282 = vmatprep.subr.bf16.mxu0 %v312_v0  ;;  %290 = vmatprep.subr.bf16.mxu1 %v312_v0  ;;  %v260_v10 = vld [vmem:[%s410_s2] ss:$0 sm:$0xff] }
   0x5   :  { %v269_v29 = vld [vmem:[%s411_s4] ss:$0 sm:$0xff] }
   0x6   :  { %v270_v54 = vld [vmem:[%s412_s5] ss:$0 sm:$0xff] }
   0x7   :  { %283 = vmatpush3.bf16.msra.mxu0 %v303_v2  ;;  %291 = vmatpush3.bf16.msra.mxu1 %v305_v7  ;;  %v271_v56 = vld [vmem:[%s413_s6] ss:$0 sm:$0xff] }
   0x8   :  { %292 = vmatprep.subr.bf16.mxu1 %v312_v0  ;;  %v107_v20 = vld [vmem:[#allocation2] sm:$0xff]  ;;  %v108_v24 = vld [vmem:[#allocation2 + $0x8] sm:$0xff] }
   0xa   :  { %285 = vmatmul.mubr.msk.bf16.vlgmr.msra.gmra.mxu0 %vm31_vm0, %v36_v6 }
   0xb   :  { %293 = vmatpush3.bf16.msra.mxu1 %v306_v8 }
   0xc   :  { %294 = vmatprep.subr.bf16.mxu1 %v312_v0 }
   0xf   :  { %295 = vmatpush3.bf16.msra.mxu1 %v307_v9 }
  0xca   :  { %v98_v11 = vpop.f32.mrf.mxu0 }
  0xcb   :  { %v99_v13 = vadd.f32 %v260_v10, %v98_v11 }
  0xcc   :  { %v286_v12 = vpop.f32.mrf.mxu0 }
  0xcd   :  { %v105_v17 = vmax.f32 %v99_v13, 0.0 }
  0xce   :  { %v101_v14 = vpop.f32.mrf.mxu0 }
  0xcf   :  { %v102_v15 = vadd.f32 %v260_v10, %v101_v14 }
  0xd0   :  { %v287_v16 = vpop.f32.mrf.mxu0 }
  0xd1   :  { %v106_v18 = vmax.f32 %v102_v15, 0.0 }
  0xd3   :  { %v109_v19 = vpack.c.bf16 %v106_v18, %v105_v17 }
  0xd5   :  { %297 = vmatmul.mubr.msk.bf16.vlgmr.msra.gmra.mxu1 %vm142_vm2, %v109_v19 }
 0x195   :  { %v180_v21 = vpop.f32.mrf.mxu1 }
 0x196   :  { %v187_v22 = vadd.f32 %v180_v21, %v107_v20 }
 0x197   :  { %v298_v23 = vpop.f32.mrf.mxu1 }
 0x198   :  { %189 = vst.msk [vmem:[#allocation2] sm:$0xff] %vm31_vm0, %v187_v22 }
 0x199   :  { %v183_v25 = vpop.f32.mrf.mxu1 }
 0x19a   :  { %v188_v26 = vadd.f32 %v183_v25, %v108_v24 }
 0x19b   :  { %v299_v27 = vpop.f32.mrf.mxu1 }
 0x19c   :  { %190 = vst.msk [vmem:[#allocation2 + $0x8] sm:$0xff] %vm31_vm0, %v188_v26 }
 0x19f   :  { %v196_v28 = vld [vmem:[#allocation2] sm:$0xff] }
 0x1a0   :  { %v198_v30 = vadd.f32 %v196_v28, %v34_v3 }
 0x1a2   :  { %v207_v31 = vadd.f32 %v269_v29, %v198_v30 }
 0x1a3   :  { %v197_v32 = vld [vmem:[#allocation2 + $0x8] sm:$0xff] }
 0x1a4   :  { %v209_v33 = vsel %vm31_vm0, %v207_v31, 0.0  ;;  %v199_v34 = vadd.f32 %v197_v32, %v35_v4 }
 0x1a5   :  { %210 = vadd.xlane.f32.xlu0 %v209_v33 }
 0x1a6   :  { %v208_v35 = vadd.f32 %v269_v29, %v199_v34 }
 0x1a8   :  { %v212_v36 = vsel %vm31_vm0, %v208_v35, 0.0 }
 0x1a9   :  { %213 = vadd.xlane.f32.xlu0 %v212_v36 }
 0x22e   :  { %v211_v37 = vpop.xlane.xlu0 %210 }
 0x22f   :  { %v216_v38 = vmul.f32 0.03125, %v211_v37 }
 0x231   :  { %v218_v39 = vsub.f32 %v207_v31, %v216_v38 }
 0x232   :  { %v214_v40 = vpop.xlane.xlu0 %213 }
 0x233   :  { %v217_v41 = vmul.f32 0.03125, %v214_v40  ;;  %v220_v42 = vmul.f32 %v218_v39, %v218_v39 }
 0x235   :  { %v219_v43 = vsub.f32 %v208_v35, %v217_v41  ;;  %v222_v44 = vsel %vm31_vm0, %v220_v42, 0.0 }
 0x236   :  { %223 = vadd.xlane.f32.xlu1 %v222_v44 }
 0x237   :  { %v221_v45 = vmul.f32 %v219_v43, %v219_v43 }
 0x239   :  { %v225_v46 = vsel %vm31_vm0, %v221_v45, 0.0 }
 0x23a   :  { %226 = vadd.xlane.f32.xlu1 %v225_v46 }
 0x2bf   :  { %v224_v47 = vpop.xlane.xlu1 %223 }
 0x2c0   :  { %v228_v48 = vmul.f32 0.03125, %v224_v47 }
 0x2c2   :  { %v230_v49 = vadd.f32 1e-05, %v228_v48 }
 0x2c3   :  { %v227_v50 = vpop.xlane.xlu1 %226 }
 0x2c4   :  { %308 = vrsqrt.f32 %v230_v49  ;;  %v229_v51 = vmul.f32 0.03125, %v227_v50 }
 0x2c6   :  { %v231_v52 = vadd.f32 1e-05, %v229_v51 }
 0x2c8   :  { %310 = vrsqrt.f32 %v231_v52 }
 0x2d1   :  { %v309_v53 = vpop.eup %308 }
 0x2d2   :  { %v234_v55 = vmul.f32 %v309_v53, %v218_v39 }
 0x2d4   :  { %v243_v57 = vmul.f32 %v270_v54, %v234_v55 }
 0x2d5   :  { %v311_v58 = vpop.eup %310 }
 0x2d6   :  { %v252_v59 = vadd.f32 %v271_v56, %v243_v57  ;;  %v235_v60 = vmul.f32 %v311_v58, %v219_v43 }
 0x2d8   :  { %254 = vst.msk [vmem:[%s414_s7] sm:$0xff] %vm31_vm0, %v252_v59  ;;  %v244_v61 = vmul.f32 %v270_v54, %v235_v60 }
 0x2da   :  { %v253_v62 = vadd.f32 %v271_v56, %v244_v61 }
 0x2dc   :  { %255 = vst.msk [vmem:[%s414_s7 + $0x8] sm:$0xff] %vm31_vm0, %v253_v62 }

// kernel: transformer_forward.15
= control target key start
LH: loop header
LB: loop body
LE: loop exit
PB: predicated region body
PF: predicated region fallthrough
CT: control target
= control target key end

     0   :  { %s1547_s17 = smov 0   ;;  %s1549_s18 = smov 0   ;;  %s1710_s0 = inlined_call_operand.vmem [shape: f32[2,8,32], index: 0, kind: input, shape index: {}, may-alias: {0,1}]   ;;  %s1711_s1 = inlined_call_operand.vmem [shape: f32[2,8,32], index: 1, kind: input, shape index: {}, may-alias: {0,1}]   ;;  %s1712_s2 = inlined_call_operand.vmem [shape: bf16[2,8,8], index: 2, kind: input, shape index: {}]   ;;  %s1713_s3 = inlined_call_operand.vmem [shape: bf16[32,32], index: 3, kind: input, shape index: {}]   ;;  %s1714_s4 = inlined_call_operand.vmem [shape: f32[1,32], index: 4, kind: input, shape index: {}]   ;;  %s1715_s5 = inlined_call_operand.vmem [shape: bf16[32,64], index: 5, kind: input, shape index: {}]   ;;  %s1716_s6 = inlined_call_operand.vmem [shape: f32[1,64], index: 6, kind: input, shape index: {}]   ;;  %s1717_s7 = inlined_call_operand.vmem [shape: bf16[32,32], index: 7, kind: input, shape index: {}]   ;;  %s1718_s8 = inlined_call_operand.vmem [shape: f32[1,32], index: 8, kind: input, shape index: {}]   ;;  %s1719_s9 = inlined_call_operand.vmem [shape: f32[1,32], index: 9, kind: input, shape index: {}]   ;;  %s1720_s10 = inlined_call_operand.vmem [shape: f32[1,32], index: 10, kind: input, shape index: {}]   ;;  %s1721_s11 = inlined_call_operand.vmem [shape: f32[2,8,32], index: 11, kind: output, shape index: {}]  }
   0x1   :  { %s1551_s19 = smov 0  }
   0x2 LB: > { %s33_s20 = sadd.s32 1, %s1469_s18  ;;  %p1265_p0 = scmp.ge.s32.totalorder %s1473_s19, 1  ;;  %s1473_s19 = sphi %s1551_s19, %s21_s19   ;;  %s1469_s18 = sphi %s1549_s18, %s1723_s18   ;;  %s1465_s17 = sphi %s1547_s17, %s1722_s17  }
   0x3   : > { %p35_p1 = scmp.ge.s32.totalorder %s33_s20, 2  ;;  %p378_p2 = scmp.lt.s32.totalorder %s1473_s19, 3 }
   0x5   : > { %s1725_s20 = smov (%p35_p1, %s33_s20), 0  ;;  %p379_p3 = pnand %p1265_p0, %p378_p2 }
   0x6   : > { %p433_p4 = scmp.lt.s32.totalorder (!%p379_p3), %s1465_s17, 1  ;;  %s1477_s25 = smov (!%p379_p3), 112  }
   0x7   : > { %382 = sbr.rel (%p379_p3) target bundleno = 1697 (0x6a1), region = 64  ;;  %s1478_s26 = smov (!%p379_p3), 120  }
   0x8   : > { %s1479_s27 = smov (!%p379_p3), 104   ;;  %s1481_s14 = smov (!%p379_p3), 80  }
   0x9   : > { %s1482_s15 = smov (!%p379_p3), 72   ;;  %s1484_s21 = smov (!%p379_p3), 8  }
   0xc   : > { %v1427_v0 = vld [vmem:[%s1713_s3 + $0x8] sm:$0xff]   ;;  %v1475_v1 = vmov 0.0   ;;  %v1429_v3 = vld [vmem:[%s1713_s3] sm:$0xff]   ;;  %vm1476_vm0 = vmmov 0   ;;  %s1727_s17 = smov (!%p433_p4, %s1465_s17), 1  ;;  %vm488_vm1 = vcmask 261120  }
   0xd   : > { %1319 = vmatprep.subr.bf16.mxu0 %v1475_v1  ;;  %1327 = vmatprep.subr.bf16.mxu1 %v1475_v1  ;;  %v1428_v2 = vld [vmem:[%s1715_s5 + $0x8] sm:$0xff]   ;;  %v1430_v4 = vld [vmem:[%s1715_s5] sm:$0xff]   ;;  %s1588_s29 = sshll.u32 %s1727_s17, 3  ;;  %vm601_vm2 = vcmask 64512   ;;  %s1268_s28 = sshll.u32 %s1727_s17, 2  ;;  %vm666_vm3 = vcmask 1043456  }
   0xe   : > { %1320 = vmatpush3.bf16.msra.mxu0 %v1427_v0  ;;  %1323 = vmatprep.mubr.msk.bf16.mxu0 %vm1476_vm0, %v1475_v1  ;;  %s439_s13 = scalar_lea.vmem %s1710_s0, %s1588_s29  ;;  %s443_s16 = scalar_lea.vmem %s1711_s1, %s1588_s29  ;;  %v1270_v9 = vld [vmem:[%s1714_s4] ss:$0 sm:$0xff]  ;;  %vm826_vm4 = vcmask 130112   ;;  %vm942_vm5 = vcmask 195712   ;;  %vm1058_vm6 = vcmask 261312  }
   0xf   : > { %1328 = vmatpush3.bf16.msra.mxu1 %v1428_v2  ;;  %1321 = vmatprep.subr.bf16.mxu0 %v1475_v1  ;;  %v1595_v5 = vld [vmem:[%s439_s13] sm:$0xff]  ;;  %s450_s13 = scalar_lea.vmem %s1712_s2, %s1268_s28  ;;  %s1480_s17 = smov 96  }
  0x10   : > { %1329 = vmatprep.subr.bf16.mxu1 %v1475_v1  ;;  %1331 = vmatprep.mubr.msk.bf16.mxu1 %vm1476_vm0, %v1475_v1  ;;  %v463_v6 = vpack.c.bf16 %v1595_v5, %v1595_v5  ;;  %v460_v7 = vld [vmem:[%s443_s16] sm:$0xff]  ;;  %s1483_s16 = smov 88  }
  0x11   : > { %v464_v8 = vpack.c.bf16 %v460_v7, %v460_v7  ;;  %v1274_v10 = vld [vmem:[%s1716_s6] ss:$0 sm:$0xff] }
  0x12   : > { %1322 = vmatpush3.bf16.msra.mxu0 %v1429_v3  ;;  %v461_v34 = vld [vmem:[%s450_s13] sm:$0xf] }
  0x13   : > { %1330 = vmatpush3.bf16.msra.mxu1 %v1430_v4  ;;  %1335 = vmatprep.subr.bf16.mxu0 %v1475_v1  ;;  %v462_v35 = vunpack.c.l.bf16 %v461_v34 }
  0x14   : > { %1341 = vmatprep.subr.bf16.mxu1 %v1475_v1 }
  0x15   : > { %1324 = vmatmul.mubr.msk.bf16.vlgmr.msra.gmra.mxu0 %vm488_vm1, %v463_v6 }
  0x16   : > { %1332 = vmatmul.mubr.msk.bf16.vlgmr.msra.gmra.mxu1 %vm488_vm1, %v464_v8  ;;  %1337 = vmatprep.mubr.msk.bf16.mxu0 %vm1476_vm0, %v1475_v1 }
  0x17   : > { %1343 = vmatprep.mubr.msk.bf16.mxu1 %vm1476_vm0, %v1475_v1 }
  0xd5   : > { %v526_v11 = vpop.f32.mrf.mxu0 }
  0xd6   : > { %v527_v12 = vadd.f32 %v1270_v9, %v526_v11  ;;  %v593_v13 = vpop.f32.mrf.mxu1 }
  0xd7   : > { %v594_v14 = vadd.f32 %v1274_v10, %v593_v13  ;;  %v1325_v15 = vpop.f32.mrf.mxu0 }
  0xd8   : > { %v532_v16 = vmul.f32 0.35355338, %v527_v12  ;;  %v1333_v17 = vpop.f32.mrf.mxu1 }
  0xd9   : > { %v1616_v18 = vpack.c.bf16 %v594_v14, %v594_v14  ;;  %v529_v19 = vpop.f32.mrf.mxu0 }
  0xda   : > { %v596_v20 = vpop.f32.mrf.mxu1  ;;  %v599_v21 = vpack.c.bf16 %v532_v16, %v532_v16 }
  0xdb   : > { %830 = vrot.lane.b32.xlu1 %v1616_v18, %s1477_s25  ;;  %714 = vrot.lane.b32.xlu0 %v1616_v18, %s1478_s26  ;;  %v1326_v22 = vpop.f32.mrf.mxu0  ;;  %v606_v23 = vsel %vm601_vm2, %v1616_v18, 0 }
  0xdc   : > { %v1334_v24 = vpop.f32.mrf.mxu1  ;;  %1336 = vmatpush3.bf16.xpose.msra.mxu0 %v606_v23 }
  0xdd   : > { %1347 = vmatprep.subr.bf16.mxu0 %v1475_v1 }
  0xdf   : > { %828 = vrot.lane.b32.xlu1 %v599_v21, %s1477_s25  ;;  %712 = vrot.lane.b32.xlu0 %v599_v21, %s1478_s26  ;;  %s1485_s26 = smov 16  }
  0xe3   : > { %944 = vrot.lane.b32.xlu1 %v599_v21, %s1479_s27  ;;  %946 = vrot.lane.b32.xlu0 %v1616_v18, %s1479_s27  ;;  %s1486_s27 = smov 24  }
  0xe4   : > { %1338 = vmatmul.mubr.msk.bf16.vlgmr.msra.gmra.mxu0 %vm601_vm2, %v599_v21 }
  0xe5   : > { %1349 = vmatprep.mubr.msk.bf16.mxu0 %vm1476_vm0, %v1475_v1 }
 0x14d   : > { %v715_v25 = vpop.permute.xlu0 %714  ;;  %v831_v27 = vpop.permute.xlu1 %830 }
 0x14e   : > { %v720_v26 = vsel %vm601_vm2, %v715_v25, 0  ;;  %v836_v29 = vsel %vm601_vm2, %v831_v27, 0 }
 0x14f   : > { %1348 = vmatpush3.bf16.xpose.msra.mxu0 %v720_v26 }
 0x150   : > { %1359 = vmatprep.subr.bf16.mxu0 %v1475_v1 }
 0x151   : > { %v713_v28 = vpop.permute.xlu0 %712  ;;  %v829_v31 = vpop.permute.xlu1 %828 }
 0x155   : > { %v947_v30 = vpop.permute.xlu0 %946  ;;  %v945_v33 = vpop.permute.xlu1 %944 }
 0x156   : > { %1350 = vmatmul.mubr.msk.bf16.vlgmr.msra.gmra.mxu0 %vm601_vm2, %v713_v28  ;;  %v952_v32 = vsel %vm601_vm2, %v947_v30, 0 }
 0x157   : > { %1360 = vmatpush3.bf16.xpose.msra.mxu0 %v836_v29  ;;  %1361 = vmatprep.mubr.msk.bf16.mxu0 %vm1476_vm0, %v1475_v1 }
 0x158   : > { %1371 = vmatprep.subr.bf16.mxu0 %v1475_v1 }
 0x15e   : > { %1362 = vmatmul.mubr.msk.bf16.vlgmr.msra.gmra.mxu0 %vm601_vm2, %v829_v31 }
 0x15f   : > { %1372 = vmatpush3.bf16.xpose.msra.mxu0 %v952_v32  ;;  %1373 = vmatprep.mubr.msk.bf16.mxu0 %vm1476_vm0, %v1475_v1 }
 0x160   : > { %1383 = vmatprep.subr.bf16.mxu0 %v1475_v1 }
 0x166   : > { %1374 = vmatmul.mubr.msk.bf16.vlgmr.msra.gmra.mxu0 %vm601_vm2, %v945_v33 }
 0x167   : > { %1387 = vmatprep.mubr.msk.bf16.mxu0 %vm1476_vm0, %v1475_v1 }
 0x1a4   : > { %v642_v36 = vpop.f32.mrf.mxu0 }
 0x1a5   : > { %v643_v37 = vadd.f32 %v642_v36, %v462_v35 }
 0x1a6   : > { %v1339_v38 = vpop.f32.mrf.mxu0 }
 0x1a7   : > { %v648_v39 = vsel %vm601_vm2, %v643_v37, -inf }
 0x1a8   : > { %649 = vmax.xlane.f32.xlu0 %v648_v39  ;;  %v645_v40 = vpop.f32.mrf.mxu0 }
 0x1aa   : > { %v1340_v41 = vpop.f32.mrf.mxu0 }
 0x216   : > { %v756_v42 = vpop.f32.mrf.mxu0 }
 0x217   : > { %v757_v43 = vadd.f32 %v756_v42, %v462_v35 }
 0x218   : > { %v1351_v44 = vpop.f32.mrf.mxu0 }
 0x219   : > { %v762_v45 = vsel %vm601_vm2, %v757_v43, -inf }
 0x21a   : > { %763 = vmax.xlane.f32.xlu1 %v762_v45  ;;  %v759_v46 = vpop.f32.mrf.mxu0 }
 0x21c   : > { %v1352_v47 = vpop.f32.mrf.mxu0 }
 0x21e   : > { %v872_v48 = vpop.f32.mrf.mxu0 }
 0x21f   : > { %v873_v49 = vadd.f32 %v872_v48, %v462_v35 }
 0x220   : > { %v1363_v50 = vpop.f32.mrf.mxu0 }
 0x221   : > { %v878_v51 = vsel %vm601_vm2, %v873_v49, -inf }
 0x222   : > { %879 = vmax.xlane.f32.xlu0 %v878_v51  ;;  %v875_v52 = vpop.f32.mrf.mxu0  ;;  %v1432_v51 = vld [vmem:[%s1717_s7] sm:$0xff]  }
 0x224   : > { %v1364_v53 = vpop.f32.mrf.mxu0 }
 0x226   : > { %v988_v54 = vpop.f32.mrf.mxu0 }
 0x227   : > { %v989_v55 = vadd.f32 %v988_v54, %v462_v35 }
 0x228   : > { %v1375_v56 = vpop.f32.mrf.mxu0 }
 0x229   : > { %v994_v57 = vsel %vm601_vm2, %v989_v55, -inf }
 0x22a   : > { %995 = vmax.xlane.f32.xlu0 %v994_v57  ;;  %v991_v58 = vpop.f32.mrf.mxu0 }
 0x22c   : > { %v1376_v59 = vpop.f32.mrf.mxu0 }
 0x231   : > { %v650_v60 = vpop.xlane.xlu0 %649 }
 0x232   : > { %v651_v61 = vsub.f32 %v643_v37, %v650_v60 }
 0x234   : > { %v652_v62 = vmul.f32 1.442695, %v651_v61 }
 0x236   : > { %1433 = vpow2.f32 %v652_v62 }
 0x243   : > { %v1434_v63 = vpop.eup %1433 }
 0x244   : > { %v654_v0 = vsel %vm601_vm2, %v1434_v63, 0.0 }
 0x245   : > { %655 = vadd.xlane.f32.xlu1 %v654_v0  ;;  %v1286_v0 = vld [vmem:[%s1718_s8] ss:$0 sm:$0xff] }
 0x256   : > { %661 = vrot.lane.b32.xlu1 %v1616_v18, %s1480_s17 }
 0x2a3   : > { %v764_v2 = vpop.xlane.xlu1 %763 }
 0x2a4   : > { %v765_v3 = vsub.f32 %v757_v43, %v764_v2 }
 0x2a6   : > { %v766_v4 = vmul.f32 1.442695, %v765_v3 }
 0x2a8   : > { %1435 = vpow2.f32 %v766_v4 }
 0x2ab   : > { %v880_v6 = vpop.xlane.xlu0 %879 }
 0x2ac   : > { %v881_v7 = vsub.f32 %v873_v49, %v880_v6  ;;  %v1431_v49 = vld [vmem:[%s1717_s7 + $0x8] sm:$0xff]  }
 0x2ad   : > { %1384 = vmatpush3.bf16.msra.mxu0 %v1431_v49 }
 0x2ae   : > { %v882_v8 = vmul.f32 1.442695, %v881_v7  ;;  %1385 = vmatprep.subr.bf16.mxu0 %v1475_v1 }
 0x2b0   : > { %1437 = vpow2.f32 %v882_v8 }
 0x2b1   : > { %1386 = vmatpush3.bf16.msra.mxu0 %v1432_v51 }
 0x2b3   : > { %v996_v9 = vpop.xlane.xlu0 %995 }
 0x2b4   : > { %v997_v10 = vsub.f32 %v989_v55, %v996_v9 }
 0x2b5   : > { %v1436_v11 = vpop.eup %1435 }
 0x2b6   : > { %v998_v12 = vmul.f32 1.442695, %v997_v10  ;;  %v768_v13 = vsel %vm601_vm2, %v1436_v11, 0.0 }
 0x2b7   : > { %769 = vadd.xlane.f32.xlu0 %v768_v13 }
 0x2b8   : > { %1439 = vpow2.f32 %v998_v12 }
 0x2bd   : > { %v1438_v14 = vpop.eup %1437 }
 0x2be   : > { %v884_v15 = vsel %vm601_vm2, %v1438_v14, 0.0 }
 0x2bf   : > { %885 = vadd.xlane.f32.xlu1 %v884_v15 }
 0x2c5   : > { %v1440_v16 = vpop.eup %1439 }
 0x2c6   : > { %v1000_v17 = vsel %vm601_vm2, %v1440_v16, 0.0 }
 0x2c7   : > { %1001 = vadd.xlane.f32.xlu0 %v1000_v17 }
 0x2ce   : > { %v656_v19 = vpop.xlane.xlu1 %655 }
 0x2cf   : > { %1441 = vrcp.f32 %v656_v19 }
 0x2d0   : > { %890 = vrot.lane.b32.xlu1 %v1616_v18, %s1481_s14 }
 0x2d2   : > { %v662_v20 = vpop.permute.xlu1 %661 }
 0x2d3   : > { %v668_v21 = vsel %vm666_vm3, %v662_v20, 0 }
 0x2d4   : > { %1342 = vmatpush3.bf16.msra.mxu1 %v668_v21  ;;  %1006 = vrot.lane.b32.xlu1 %v1616_v18, %s1482_s15  ;;  %v1291_v21 = vld [vmem:[%s1720_s10] ss:$0 sm:$0xff] }
 0x2d5   : > { %1353 = vmatprep.subr.bf16.mxu1 %v1475_v1 }
 0x2dc   : > { %v1442_v22 = vpop.eup %1441 }
 0x2dd   : > { %774 = vrot.lane.b32.xlu0 %v1616_v18, %s1483_s16  ;;  %v658_v23 = vmul.f32 %v1442_v22, %v1434_v63 }
 0x2df   : > { %v659_v24 = vpack.c.bf16 %v658_v23, %v658_v23 }
 0x2e1   : > { %1344 = vmatmul.mubr.msk.bf16.vlgmr.msra.gmra.mxu1 %vm601_vm2, %v659_v24 }
 0x2e2   : > { %1355 = vmatprep.mubr.msk.bf16.mxu1 %vm1476_vm0, %v1475_v1 }
 0x340   : > { %v770_v25 = vpop.xlane.xlu0 %769 }
 0x341   : > { %1443 = vrcp.f32 %v770_v25 }
 0x348   : > { %v886_v26 = vpop.xlane.xlu1 %885 }
 0x349   : > { %1445 = vrcp.f32 %v886_v26 }
 0x34c   : > { %v891_v32 = vpop.permute.xlu1 %890 }
 0x34d   : > { %v896_v34 = vsel %vm666_vm3, %v891_v32, 0 }
 0x34e   : > { %v1444_v27 = vpop.eup %1443 }
 0x34f   : > { %v772_v29 = vmul.f32 %v1444_v27, %v1436_v11 }
 0x350   : > { %v1002_v28 = vpop.xlane.xlu0 %1001  ;;  %v1007_v36 = vpop.permute.xlu1 %1006 }
 0x351   : > { %1447 = vrcp.f32 %v1002_v28  ;;  %v773_v18 = vpack.c.bf16 %v772_v29, %v772_v29  ;;  %v1012_v39 = vsel %vm666_vm3, %v1007_v36, 0 }
 0x354   : > { %v775_v30 = vpop.permute.xlu0 %774 }
 0x355   : > { %v780_v31 = vsel %vm666_vm3, %v775_v30, 0 }
 0x356   : > { %1354 = vmatpush3.bf16.msra.mxu1 %v780_v31  ;;  %v1446_v33 = vpop.eup %1445 }
 0x357   : > { %1365 = vmatprep.subr.bf16.mxu1 %v1475_v1  ;;  %v888_v35 = vmul.f32 %v1446_v33, %v1438_v14 }
 0x359   : > { %1356 = vmatmul.mubr.msk.bf16.vlgmr.msra.gmra.mxu1 %vm601_vm2, %v773_v18  ;;  %v889_v37 = vpack.c.bf16 %v888_v35, %v888_v35 }
 0x35a   : > { %1366 = vmatpush3.bf16.msra.mxu1 %v896_v34  ;;  %1367 = vmatprep.mubr.msk.bf16.mxu1 %vm1476_vm0, %v1475_v1 }
 0x35b   : > { %1377 = vmatprep.subr.bf16.mxu1 %v1475_v1 }
 0x35e   : > { %v1448_v38 = vpop.eup %1447 }
 0x35f   : > { %v1004_v40 = vmul.f32 %v1448_v38, %v1440_v16 }
 0x361   : > { %1368 = vmatmul.mubr.msk.bf16.vlgmr.msra.gmra.mxu1 %vm601_vm2, %v889_v37  ;;  %v1005_v41 = vpack.c.bf16 %v1004_v40, %v1004_v40 }
 0x362   : > { %1378 = vmatpush3.bf16.msra.mxu1 %v1012_v39  ;;  %1379 = vmatprep.mubr.msk.bf16.mxu1 %vm1476_vm0, %v1475_v1 }
 0x369   : > { %1380 = vmatmul.mubr.msk.bf16.vlgmr.msra.gmra.mxu1 %vm601_vm2, %v1005_v41 }
 0x3a1   : > { %v704_v42 = vpop.f32.mrf.mxu1 }
 0x3a2   : > { %710 = vst.msk [vmem:[#allocation2] sm:$0xff] %vm601_vm2, %v704_v42 }
 0x3a3   : > { %v1345_v43 = vpop.f32.mrf.mxu1 }
 0x3a5   : > { %v707_v44 = vpop.f32.mrf.mxu1 }
 0x3a7   : > { %v1346_v45 = vpop.f32.mrf.mxu1 }
 0x419   : > { %v816_v46 = vpop.f32.mrf.mxu1 }
 0x41a   : > { %823 = vrot.lane.b32.xlu0 %v816_v46, %s1484_s21  ;;  %s457_s21 = scalar_lea.vmem %s1721_s11, %s1588_s29 }
 0x41b   : > { %v1357_v47 = vpop.f32.mrf.mxu1 }
 0x41d   : > { %v819_v48 = vpop.f32.mrf.mxu1 }
 0x41f   : > { %v1358_v50 = vpop.f32.mrf.mxu1 }
 0x421   : > { %v932_v52 = vpop.f32.mrf.mxu1 }
 0x422   : > { %939 = vrot.lane.b32.xlu1 %v932_v52, %s1485_s26 }
 0x423   : > { %v1369_v53 = vpop.f32.mrf.mxu1 }
 0x425   : > { %v935_v54 = vpop.f32.mrf.mxu1 }
 0x427   : > { %v1370_v55 = vpop.f32.mrf.mxu1 }
 0x429   : > { %v1048_v56 = vpop.f32.mrf.mxu1 }
 0x42a   : > { %1055 = vrot.lane.b32.xlu0 %v1048_v56, %s1486_s27 }
 0x42b   : > { %v1381_v57 = vpop.f32.mrf.mxu1 }
 0x42d   : > { %v1051_v58 = vpop.f32.mrf.mxu1 }
 0x42f   : > { %v1382_v59 = vpop.f32.mrf.mxu1 }
 0x48c   : > { %v824_v60 = vpop.permute.xlu0 %823 }
 0x48d   : > { %827 = vst.msk [vmem:[#allocation2] sm:$0xff] %vm826_vm4, %v824_v60 }
 0x494   : > { %v940_v61 = vpop.permute.xlu1 %939 }
 0x495   : > { %943 = vst.msk [vmem:[#allocation2] sm:$0xff] %vm942_vm5, %v940_v61 }
 0x49c   : > { %v1056_v1 = vpop.permute.xlu0 %1055 }
 0x49d   : > { %1059 = vst.msk [vmem:[#allocation2] sm:$0xff] %vm1058_vm6, %v1056_v1 }
 0x4a4   : > { %v1060_v62 = vld [vmem:[#allocation2] sm:$0xff] }
 0x4a5   : > { %v1061_v63 = vpack.c.bf16 %v1060_v62, %v1060_v62 }
 0x4a7   : > { %1388 = vmatmul.mubr.msk.bf16.vlgmr.msra.gmra.mxu0 %vm488_vm1, %v1061_v63 }
 0x567   : > { %v1122_v2 = vpop.f32.mrf.mxu0 }
 0x568   : > { %v1123_v3 = vadd.f32 %v1286_v0, %v1122_v2 }
 0x569   : > { %v1389_v4 = vpop.f32.mrf.mxu0 }
 0x56a   : > { %v1128_v6 = vadd.f32 %v1123_v3, %v1595_v5  ;;  %v1290_v5 = vld [vmem:[%s1719_s9] ss:$0 sm:$0xff] }
 0x56b   : > { %v1125_v7 = vpop.f32.mrf.mxu0 }
 0x56c   : > { %v1129_v8 = vsel %vm488_vm1, %v1128_v6, 0.0 }
 0x56d   : > { %1130 = vadd.xlane.f32.xlu1 %v1129_v8  ;;  %v1390_v9 = vpop.f32.mrf.mxu0 }
 0x5f6   : > { %v1131_v10 = vpop.xlane.xlu1 %1130 }
 0x5f7   : > { %v1133_v11 = vmul.f32 0.03125, %v1131_v10 }
 0x5f9   : > { %v1134_v12 = vsub.f32 %v1128_v6, %v1133_v11 }
 0x5fb   : > { %v1135_v13 = vmul.f32 %v1134_v12, %v1134_v12 }
 0x5fd   : > { %v1136_v14 = vsel %vm488_vm1, %v1135_v13, 0.0 }
 0x5fe   : > { %1137 = vadd.xlane.f32.xlu0 %v1136_v14 }
 0x687   : > { %v1138_v15 = vpop.xlane.xlu0 %1137 }
 0x688   : > { %v1139_v16 = vmul.f32 0.03125, %v1138_v15 }
 0x68a   : > { %v1140_v17 = vadd.f32 1e-05, %v1139_v16 }
 0x68c   : > { %1449 = vrsqrt.f32 %v1140_v17 }
 0x699   : > { %v1450_v19 = vpop.eup %1449 }
 0x69a   : > { %v1142_v20 = vmul.f32 %v1450_v19, %v1134_v12 }
 0x69c   : > { %v1150_v22 = vmul.f32 %v1290_v5, %v1142_v20 }
 0x69e   : > { %v1158_v23 = vadd.f32 %v1291_v21, %v1150_v22 }
 0x6a0   : > { %1159 = vst.msk [vmem:[%s457_s21] sm:$0xff] %vm488_vm1, %v1158_v23 }
 0x6a1 PF: > { %s21_s19 = sadd.s32 1, %s1473_s19   ;;  %s1722_s17 = smov %s1469_s18 }
 0x6a2   : > { %p18_p5 = scmp.ge.s32.totalorder %s21_s19, 4   ;;  %s1723_s18 = smov %s1725_s20 }
 0x6a4   :  { %20 = sbr.rel (!%p18_p5) target bundleno = 2 (0x2), region = 100 }

// kernel: transformer_forward.11
= control target key start
LH: loop header
LB: loop body
LE: loop exit
PB: predicated region body
PF: predicated region fallthrough
CT: control target
= control target key end

     0   :  { %s1530_s17 = smov 0   ;;  %s1532_s18 = smov 0   ;;  %s1693_s0 = inlined_call_operand.vmem [shape: f32[2,8,32], index: 0, kind: input, shape index: {}, may-alias: {0,1}]   ;;  %s1694_s1 = inlined_call_operand.vmem [shape: f32[2,8,32], index: 1, kind: input, shape index: {}, may-alias: {0,1}]   ;;  %s1695_s2 = inlined_call_operand.vmem [shape: bf16[2,1,8], index: 2, kind: input, shape index: {}]   ;;  %s1696_s3 = inlined_call_operand.vmem [shape: bf16[32,32], index: 3, kind: input, shape index: {}]   ;;  %s1697_s4 = inlined_call_operand.vmem [shape: f32[1,32], index: 4, kind: input, shape index: {}]   ;;  %s1698_s5 = inlined_call_operand.vmem [shape: bf16[32,64], index: 5, kind: input, shape index: {}]   ;;  %s1699_s6 = inlined_call_operand.vmem [shape: f32[1,64], index: 6, kind: input, shape index: {}]   ;;  %s1700_s7 = inlined_call_operand.vmem [shape: bf16[32,32], index: 7, kind: input, shape index: {}]   ;;  %s1701_s8 = inlined_call_operand.vmem [shape: f32[1,32], index: 8, kind: input, shape index: {}]   ;;  %s1702_s9 = inlined_call_operand.vmem [shape: f32[1,32], index: 9, kind: input, shape index: {}]   ;;  %s1703_s10 = inlined_call_operand.vmem [shape: f32[1,32], index: 10, kind: input, shape index: {}]   ;;  %s1704_s11 = inlined_call_operand.vmem [shape: f32[2,8,32], index: 11, kind: output, shape index: {}]  }
   0x1   :  { %s1534_s19 = smov 0  }
   0x2 LB: > { %s33_s20 = sadd.s32 1, %s1452_s18  ;;  %p1249_p0 = scmp.ge.s32.totalorder %s1456_s19, 1  ;;  %s1456_s19 = sphi %s1534_s19, %s21_s19   ;;  %s1452_s18 = sphi %s1532_s18, %s1706_s18   ;;  %s1448_s17 = sphi %s1530_s17, %s1705_s17  }
   0x3   : > { %p35_p1 = scmp.ge.s32.totalorder %s33_s20, 2  ;;  %p372_p2 = scmp.lt.s32.totalorder %s1456_s19, 3 }
   0x5   : > { %s1708_s20 = smov (%p35_p1, %s33_s20), 0  ;;  %p373_p3 = pnand %p1249_p0, %p372_p2 }
   0x6   : > { %p423_p4 = scmp.lt.s32.totalorder (!%p373_p3), %s1448_s17, 1  ;;  %s1460_s25 = smov (!%p373_p3), 112  }
   0x7   : > { %376 = sbr.rel (%p373_p3) target bundleno = 1697 (0x6a1), region = 64  ;;  %s1461_s26 = smov (!%p373_p3), 120  }
   0x8   : > { %s1462_s27 = smov (!%p373_p3), 104   ;;  %s1465_s14 = smov (!%p373_p3), 72  }
   0x9   : > { %s1466_s15 = smov (!%p373_p3), 88  }
   0xc   : > { %v1410_v0 = vld [vmem:[%s1696_s3 + $0x8] sm:$0xff]   ;;  %v1458_v1 = vmov 0.0   ;;  %v1412_v3 = vld [vmem:[%s1696_s3] sm:$0xff]   ;;  %vm1459_vm0 = vmmov 0   ;;  %s1710_s17 = smov (!%p423_p4, %s1448_s17), 1  ;;  %vm474_vm1 = vcmask 261120   ;;  %v587_v34 = vlaneseq }
   0xd   : > { %1302 = vmatprep.subr.bf16.mxu0 %v1458_v1  ;;  %1310 = vmatprep.subr.bf16.mxu1 %v1458_v1  ;;  %v1411_v2 = vld [vmem:[%s1698_s5 + $0x8] sm:$0xff]   ;;  %v1413_v4 = vld [vmem:[%s1698_s5] sm:$0xff]   ;;  %s1571_s29 = sshll.u32 %s1710_s17, 3  ;;  %vm591_vm2 = vcmask 64512   ;;  %s436_s12 = scalar_lea.vmem %s1695_s2, %s1710_s17  ;;  %vm656_vm3 = vcmask 1043456   ;;  %vm816_vm4 = vcmask 130112  }
   0xe   : > { %1303 = vmatpush3.bf16.msra.mxu0 %v1410_v0  ;;  %1306 = vmatprep.mubr.msk.bf16.mxu0 %vm1459_vm0, %v1458_v1  ;;  %s429_s13 = scalar_lea.vmem %s1693_s0, %s1571_s29  ;;  %s433_s16 = scalar_lea.vmem %s1694_s1, %s1571_s29  ;;  %v1253_v9 = vld [vmem:[%s1697_s4] ss:$0 sm:$0xff]  ;;  %v588_v35 = vshrl.u32 %v587_v34, 7  ;;  %vm932_vm5 = vcmask 195712   ;;  %vm1048_vm6 = vcmask 261312  }
   0xf   : > { %1311 = vmatpush3.bf16.msra.mxu1 %v1411_v2  ;;  %1304 = vmatprep.subr.bf16.mxu0 %v1458_v1  ;;  %v1578_v5 = vld [vmem:[%s429_s13] sm:$0xff]  ;;  %s1463_s17 = smov 96   ;;  %s1464_s13 = smov 80  }
  0x10   : > { %1312 = vmatprep.subr.bf16.mxu1 %v1458_v1  ;;  %1314 = vmatprep.mubr.msk.bf16.mxu1 %vm1459_vm0, %v1458_v1  ;;  %v449_v6 = vpack.c.bf16 %v1578_v5, %v1578_v5  ;;  %v446_v7 = vld [vmem:[%s433_s16] sm:$0xff]  ;;  %v589_v38 = vsub.s32 0, %v588_v35  ;;  %s1467_s16 = smov 8  }
  0x11   : > { %v450_v8 = vpack.c.bf16 %v446_v7, %v446_v7  ;;  %v1257_v10 = vld [vmem:[%s1699_s6] ss:$0 sm:$0xff] }
  0x12   : > { %1305 = vmatpush3.bf16.msra.mxu0 %v1412_v3  ;;  %v447_v36 = vld [vmem:[%s436_s12] sm:$0x1] }
  0x13   : > { %1313 = vmatpush3.bf16.msra.mxu1 %v1413_v4  ;;  %1318 = vmatprep.subr.bf16.mxu0 %v1458_v1  ;;  %v448_v37 = vunpack.c.l.bf16 %v447_v36 }
  0x14   : > { %1324 = vmatprep.subr.bf16.mxu1 %v1458_v1 }
  0x15   : > { %1307 = vmatmul.mubr.msk.bf16.vlgmr.msra.gmra.mxu0 %vm474_vm1, %v449_v6  ;;  %v590_v39 = vrot.slane %v448_v37, %v589_v38 }
  0x16   : > { %1315 = vmatmul.mubr.msk.bf16.vlgmr.msra.gmra.mxu1 %vm474_vm1, %v450_v8  ;;  %1320 = vmatprep.mubr.msk.bf16.mxu0 %vm1459_vm0, %v1458_v1 }
  0x17   : > { %1326 = vmatprep.mubr.msk.bf16.mxu1 %vm1459_vm0, %v1458_v1 }
  0xd5   : > { %v512_v11 = vpop.f32.mrf.mxu0 }
  0xd6   : > { %v513_v12 = vadd.f32 %v1253_v9, %v512_v11  ;;  %v579_v13 = vpop.f32.mrf.mxu1 }
  0xd7   : > { %v580_v14 = vadd.f32 %v1257_v10, %v579_v13  ;;  %v1308_v15 = vpop.f32.mrf.mxu0 }
  0xd8   : > { %v518_v16 = vmul.f32 0.35355338, %v513_v12  ;;  %v1316_v17 = vpop.f32.mrf.mxu1 }
  0xd9   : > { %v1599_v18 = vpack.c.bf16 %v580_v14, %v580_v14  ;;  %v515_v19 = vpop.f32.mrf.mxu0 }
  0xda   : > { %v582_v20 = vpop.f32.mrf.mxu1  ;;  %v585_v21 = vpack.c.bf16 %v518_v16, %v518_v16 }
  0xdb   : > { %820 = vrot.lane.b32.xlu1 %v1599_v18, %s1460_s25  ;;  %704 = vrot.lane.b32.xlu0 %v1599_v18, %s1461_s26  ;;  %v1309_v22 = vpop.f32.mrf.mxu0  ;;  %v596_v23 = vsel %vm591_vm2, %v1599_v18, 0 }
  0xdc   : > { %v1317_v24 = vpop.f32.mrf.mxu1  ;;  %1319 = vmatpush3.bf16.xpose.msra.mxu0 %v596_v23 }
  0xdd   : > { %1330 = vmatprep.subr.bf16.mxu0 %v1458_v1 }
  0xdf   : > { %818 = vrot.lane.b32.xlu1 %v585_v21, %s1460_s25  ;;  %702 = vrot.lane.b32.xlu0 %v585_v21, %s1461_s26  ;;  %s1468_s25 = smov 16   ;;  %s1469_s26 = smov 24  }
  0xe3   : > { %934 = vrot.lane.b32.xlu1 %v585_v21, %s1462_s27  ;;  %936 = vrot.lane.b32.xlu0 %v1599_v18, %s1462_s27 }
  0xe4   : > { %1321 = vmatmul.mubr.msk.bf16.vlgmr.msra.gmra.mxu0 %vm591_vm2, %v585_v21 }
  0xe5   : > { %1332 = vmatprep.mubr.msk.bf16.mxu0 %vm1459_vm0, %v1458_v1 }
 0x14d   : > { %v705_v25 = vpop.permute.xlu0 %704  ;;  %v821_v27 = vpop.permute.xlu1 %820 }
 0x14e   : > { %v710_v26 = vsel %vm591_vm2, %v705_v25, 0  ;;  %v826_v29 = vsel %vm591_vm2, %v821_v27, 0 }
 0x14f   : > { %1331 = vmatpush3.bf16.xpose.msra.mxu0 %v710_v26 }
 0x150   : > { %1342 = vmatprep.subr.bf16.mxu0 %v1458_v1 }
 0x151   : > { %v703_v28 = vpop.permute.xlu0 %702  ;;  %v819_v31 = vpop.permute.xlu1 %818 }
 0x155   : > { %v937_v30 = vpop.permute.xlu0 %936  ;;  %v935_v33 = vpop.permute.xlu1 %934 }
 0x156   : > { %1333 = vmatmul.mubr.msk.bf16.vlgmr.msra.gmra.mxu0 %vm591_vm2, %v703_v28  ;;  %v942_v32 = vsel %vm591_vm2, %v937_v30, 0 }
 0x157   : > { %1343 = vmatpush3.bf16.xpose.msra.mxu0 %v826_v29  ;;  %1344 = vmatprep.mubr.msk.bf16.mxu0 %vm1459_vm0, %v1458_v1 }
 0x158   : > { %1354 = vmatprep.subr.bf16.mxu0 %v1458_v1 }
 0x15e   : > { %1345 = vmatmul.mubr.msk.bf16.vlgmr.msra.gmra.mxu0 %vm591_vm2, %v819_v31 }
 0x15f   : > { %1355 = vmatpush3.bf16.xpose.msra.mxu0 %v942_v32  ;;  %1356 = vmatprep.mubr.msk.bf16.mxu0 %vm1459_vm0, %v1458_v1 }
 0x160   : > { %1366 = vmatprep.subr.bf16.mxu0 %v1458_v1 }
 0x166   : > { %1357 = vmatmul.mubr.msk.bf16.vlgmr.msra.gmra.mxu0 %vm591_vm2, %v935_v33 }
 0x167   : > { %1370 = vmatprep.mubr.msk.bf16.mxu0 %vm1459_vm0, %v1458_v1 }
 0x1a4   : > { %v632_v40 = vpop.f32.mrf.mxu0 }
 0x1a5   : > { %v633_v41 = vadd.f32 %v632_v40, %v590_v39 }
 0x1a6   : > { %v1322_v42 = vpop.f32.mrf.mxu0 }
 0x1a7   : > { %v638_v43 = vsel %vm591_vm2, %v633_v41, -inf }
 0x1a8   : > { %639 = vmax.xlane.f32.xlu0 %v638_v43  ;;  %v635_v44 = vpop.f32.mrf.mxu0 }
 0x1aa   : > { %v1323_v45 = vpop.f32.mrf.mxu0 }
 0x216   : > { %v746_v46 = vpop.f32.mrf.mxu0 }
 0x217   : > { %v747_v47 = vadd.f32 %v746_v46, %v590_v39 }
 0x218   : > { %v1334_v48 = vpop.f32.mrf.mxu0 }
 0x219   : > { %v752_v49 = vsel %vm591_vm2, %v747_v47, -inf }
 0x21a   : > { %753 = vmax.xlane.f32.xlu1 %v752_v49  ;;  %v749_v50 = vpop.f32.mrf.mxu0 }
 0x21c   : > { %v1335_v51 = vpop.f32.mrf.mxu0 }
 0x21e   : > { %v862_v52 = vpop.f32.mrf.mxu0 }
 0x21f   : > { %v863_v53 = vadd.f32 %v862_v52, %v590_v39 }
 0x220   : > { %v1346_v54 = vpop.f32.mrf.mxu0 }
 0x221   : > { %v868_v55 = vsel %vm591_vm2, %v863_v53, -inf }
 0x222   : > { %869 = vmax.xlane.f32.xlu0 %v868_v55  ;;  %v865_v56 = vpop.f32.mrf.mxu0  ;;  %v1415_v55 = vld [vmem:[%s1700_s7] sm:$0xff]  }
 0x224   : > { %v1347_v57 = vpop.f32.mrf.mxu0 }
 0x226   : > { %v978_v58 = vpop.f32.mrf.mxu0 }
 0x227   : > { %v979_v59 = vadd.f32 %v978_v58, %v590_v39 }
 0x228   : > { %v1358_v60 = vpop.f32.mrf.mxu0 }
 0x229   : > { %v984_v61 = vsel %vm591_vm2, %v979_v59, -inf }
 0x22a   : > { %985 = vmax.xlane.f32.xlu0 %v984_v61  ;;  %v981_v62 = vpop.f32.mrf.mxu0 }
 0x22c   : > { %v1359_v63 = vpop.f32.mrf.mxu0 }
 0x231   : > { %v640_v0 = vpop.xlane.xlu0 %639 }
 0x232   : > { %v641_v2 = vsub.f32 %v633_v41, %v640_v0 }
 0x234   : > { %v642_v3 = vmul.f32 1.442695, %v641_v2 }
 0x236   : > { %1416 = vpow2.f32 %v642_v3 }
 0x243   : > { %v1417_v4 = vpop.eup %1416 }
 0x244   : > { %v644_v6 = vsel %vm591_vm2, %v1417_v4, 0.0 }
 0x245   : > { %645 = vadd.xlane.f32.xlu1 %v644_v6  ;;  %v1269_v6 = vld [vmem:[%s1701_s8] ss:$0 sm:$0xff] }
 0x256   : > { %651 = vrot.lane.b32.xlu1 %v1599_v18, %s1463_s17 }
 0x2a3   : > { %v754_v7 = vpop.xlane.xlu1 %753 }
 0x2a4   : > { %v755_v8 = vsub.f32 %v747_v47, %v754_v7 }
 0x2a6   : > { %v756_v9 = vmul.f32 1.442695, %v755_v8 }
 0x2a8   : > { %1418 = vpow2.f32 %v756_v9 }
 0x2ab   : > { %v870_v10 = vpop.xlane.xlu0 %869 }
 0x2ac   : > { %v871_v11 = vsub.f32 %v863_v53, %v870_v10  ;;  %v1414_v53 = vld [vmem:[%s1700_s7 + $0x8] sm:$0xff]  }
 0x2ad   : > { %1367 = vmatpush3.bf16.msra.mxu0 %v1414_v53 }
 0x2ae   : > { %v872_v12 = vmul.f32 1.442695, %v871_v11  ;;  %1368 = vmatprep.subr.bf16.mxu0 %v1458_v1 }
 0x2b0   : > { %1420 = vpow2.f32 %v872_v12 }
 0x2b1   : > { %1369 = vmatpush3.bf16.msra.mxu0 %v1415_v55 }
 0x2b3   : > { %v986_v13 = vpop.xlane.xlu0 %985 }
 0x2b4   : > { %v987_v14 = vsub.f32 %v979_v59, %v986_v13 }
 0x2b5   : > { %v1419_v15 = vpop.eup %1418 }
 0x2b6   : > { %v988_v16 = vmul.f32 1.442695, %v987_v14  ;;  %v758_v17 = vsel %vm591_vm2, %v1419_v15, 0.0 }
 0x2b7   : > { %759 = vadd.xlane.f32.xlu0 %v758_v17 }
 0x2b8   : > { %1422 = vpow2.f32 %v988_v16 }
 0x2bd   : > { %v1421_v19 = vpop.eup %1420 }
 0x2be   : > { %v874_v20 = vsel %vm591_vm2, %v1421_v19, 0.0 }
 0x2bf   : > { %875 = vadd.xlane.f32.xlu1 %v874_v20 }
 0x2c5   : > { %v1423_v21 = vpop.eup %1422 }
 0x2c6   : > { %v990_v22 = vsel %vm591_vm2, %v1423_v21, 0.0 }
 0x2c7   : > { %991 = vadd.xlane.f32.xlu0 %v990_v22 }
 0x2ce   : > { %v646_v23 = vpop.xlane.xlu1 %645 }
 0x2cf   : > { %1424 = vrcp.f32 %v646_v23 }
 0x2d0   : > { %880 = vrot.lane.b32.xlu1 %v1599_v18, %s1464_s13 }
 0x2d2   : > { %v652_v24 = vpop.permute.xlu1 %651 }
 0x2d3   : > { %v658_v25 = vsel %vm656_vm3, %v652_v24, 0 }
 0x2d4   : > { %1325 = vmatpush3.bf16.msra.mxu1 %v658_v25  ;;  %996 = vrot.lane.b32.xlu1 %v1599_v18, %s1465_s14  ;;  %v1274_v25 = vld [vmem:[%s1703_s10] ss:$0 sm:$0xff] }
 0x2d5   : > { %1336 = vmatprep.subr.bf16.mxu1 %v1458_v1 }
 0x2dc   : > { %v1425_v26 = vpop.eup %1424 }
 0x2dd   : > { %764 = vrot.lane.b32.xlu0 %v1599_v18, %s1466_s15  ;;  %v648_v27 = vmul.f32 %v1425_v26, %v1417_v4 }
 0x2df   : > { %v649_v28 = vpack.c.bf16 %v648_v27, %v648_v27 }
 0x2e1   : > { %1327 = vmatmul.mubr.msk.bf16.vlgmr.msra.gmra.mxu1 %vm591_vm2, %v649_v28 }
 0x2e2   : > { %1338 = vmatprep.mubr.msk.bf16.mxu1 %vm1459_vm0, %v1458_v1 }
 0x340   : > { %v760_v29 = vpop.xlane.xlu0 %759 }
 0x341   : > { %1426 = vrcp.f32 %v760_v29 }
 0x348   : > { %v876_v30 = vpop.xlane.xlu1 %875 }
 0x349   : > { %1428 = vrcp.f32 %v876_v30 }
 0x34c   : > { %v881_v36 = vpop.permute.xlu1 %880 }
 0x34d   : > { %v886_v38 = vsel %vm656_vm3, %v881_v36, 0 }
 0x34e   : > { %v1427_v31 = vpop.eup %1426 }
 0x34f   : > { %v762_v33 = vmul.f32 %v1427_v31, %v1419_v15 }
 0x350   : > { %v992_v32 = vpop.xlane.xlu0 %991  ;;  %v997_v40 = vpop.permute.xlu1 %996 }
 0x351   : > { %1430 = vrcp.f32 %v992_v32  ;;  %v763_v18 = vpack.c.bf16 %v762_v33, %v762_v33  ;;  %v1002_v43 = vsel %vm656_vm3, %v997_v40, 0 }
 0x354   : > { %v765_v34 = vpop.permute.xlu0 %764 }
 0x355   : > { %v770_v35 = vsel %vm656_vm3, %v765_v34, 0 }
 0x356   : > { %1337 = vmatpush3.bf16.msra.mxu1 %v770_v35  ;;  %v1429_v37 = vpop.eup %1428 }
 0x357   : > { %1348 = vmatprep.subr.bf16.mxu1 %v1458_v1  ;;  %v878_v39 = vmul.f32 %v1429_v37, %v1421_v19 }
 0x359   : > { %1339 = vmatmul.mubr.msk.bf16.vlgmr.msra.gmra.mxu1 %vm591_vm2, %v763_v18  ;;  %v879_v41 = vpack.c.bf16 %v878_v39, %v878_v39 }
 0x35a   : > { %1349 = vmatpush3.bf16.msra.mxu1 %v886_v38  ;;  %1350 = vmatprep.mubr.msk.bf16.mxu1 %vm1459_vm0, %v1458_v1 }
 0x35b   : > { %1360 = vmatprep.subr.bf16.mxu1 %v1458_v1 }
 0x35e   : > { %v1431_v42 = vpop.eup %1430 }
 0x35f   : > { %v994_v44 = vmul.f32 %v1431_v42, %v1423_v21 }
 0x361   : > { %1351 = vmatmul.mubr.msk.bf16.vlgmr.msra.gmra.mxu1 %vm591_vm2, %v879_v41  ;;  %v995_v45 = vpack.c.bf16 %v994_v44, %v994_v44 }
 0x362   : > { %1361 = vmatpush3.bf16.msra.mxu1 %v1002_v43  ;;  %1362 = vmatprep.mubr.msk.bf16.mxu1 %vm1459_vm0, %v1458_v1 }
 0x369   : > { %1363 = vmatmul.mubr.msk.bf16.vlgmr.msra.gmra.mxu1 %vm591_vm2, %v995_v45 }
 0x3a1   : > { %v694_v46 = vpop.f32.mrf.mxu1 }
 0x3a2   : > { %700 = vst.msk [vmem:[#allocation2] sm:$0xff] %vm591_vm2, %v694_v46 }
 0x3a3   : > { %v1328_v47 = vpop.f32.mrf.mxu1 }
 0x3a5   : > { %v697_v48 = vpop.f32.mrf.mxu1 }
 0x3a7   : > { %v1329_v49 = vpop.f32.mrf.mxu1 }
 0x419   : > { %v806_v50 = vpop.f32.mrf.mxu1 }
 0x41a   : > { %813 = vrot.lane.b32.xlu0 %v806_v50, %s1467_s16  ;;  %s443_s16 = scalar_lea.vmem %s1704_s11, %s1571_s29 }
 0x41b   : > { %v1340_v51 = vpop.f32.mrf.mxu1 }
 0x41d   : > { %v809_v52 = vpop.f32.mrf.mxu1 }
 0x41f   : > { %v1341_v54 = vpop.f32.mrf.mxu1 }
 0x421   : > { %v922_v56 = vpop.f32.mrf.mxu1 }
 0x422   : > { %929 = vrot.lane.b32.xlu1 %v922_v56, %s1468_s25 }
 0x423   : > { %v1352_v57 = vpop.f32.mrf.mxu1 }
 0x425   : > { %v925_v58 = vpop.f32.mrf.mxu1 }
 0x427   : > { %v1353_v59 = vpop.f32.mrf.mxu1 }
 0x429   : > { %v1038_v60 = vpop.f32.mrf.mxu1 }
 0x42a   : > { %1045 = vrot.lane.b32.xlu0 %v1038_v60, %s1469_s26 }
 0x42b   : > { %v1364_v61 = vpop.f32.mrf.mxu1 }
 0x42d   : > { %v1041_v62 = vpop.f32.mrf.mxu1 }
 0x42f   : > { %v1365_v63 = vpop.f32.mrf.mxu1 }
 0x48c   : > { %v814_v0 = vpop.permute.xlu0 %813 }
 0x48d   : > { %817 = vst.msk [vmem:[#allocation2] sm:$0xff] %vm816_vm4, %v814_v0 }
 0x494   : > { %v930_v2 = vpop.permute.xlu1 %929 }
 0x495   : > { %933 = vst.msk [vmem:[#allocation2] sm:$0xff] %vm932_vm5, %v930_v2 }
 0x49c   : > { %v1046_v1 = vpop.permute.xlu0 %1045 }
 0x49d   : > { %1049 = vst.msk [vmem:[#allocation2] sm:$0xff] %vm1048_vm6, %v1046_v1 }
 0x4a4   : > { %v1050_v3 = vld [vmem:[#allocation2] sm:$0xff] }
 0x4a5   : > { %v1051_v4 = vpack.c.bf16 %v1050_v3, %v1050_v3 }
 0x4a7   : > { %1371 = vmatmul.mubr.msk.bf16.vlgmr.msra.gmra.mxu0 %vm474_vm1, %v1051_v4 }
 0x567   : > { %v1112_v7 = vpop.f32.mrf.mxu0 }
 0x568   : > { %v1113_v8 = vadd.f32 %v1269_v6, %v1112_v7 }
 0x569   : > { %v1372_v9 = vpop.f32.mrf.mxu0 }
 0x56a   : > { %v1118_v10 = vadd.f32 %v1113_v8, %v1578_v5  ;;  %v1273_v5 = vld [vmem:[%s1702_s9] ss:$0 sm:$0xff] }
 0x56b   : > { %v1115_v11 = vpop.f32.mrf.mxu0 }
 0x56c   : > { %v1119_v12 = vsel %vm474_vm1, %v1118_v10, 0.0 }
 0x56d   : > { %1120 = vadd.xlane.f32.xlu1 %v1119_v12  ;;  %v1373_v13 = vpop.f32.mrf.mxu0 }
 0x5f6   : > { %v1121_v14 = vpop.xlane.xlu1 %1120 }
 0x5f7   : > { %v1123_v15 = vmul.f32 0.03125, %v1121_v14 }
 0x5f9   : > { %v1124_v16 = vsub.f32 %v1118_v10, %v1123_v15 }
 0x5fb   : > { %v1125_v17 = vmul.f32 %v1124_v16, %v1124_v16 }
 0x5fd   : > { %v1126_v19 = vsel %vm474_vm1, %v1125_v17, 0.0 }
 0x5fe   : > { %1127 = vadd.xlane.f32.xlu0 %v1126_v19 }
 0x687   : > { %v1128_v20 = vpop.xlane.xlu0 %1127 }
 0x688   : > { %v1129_v21 = vmul.f32 0.03125, %v1128_v20 }
 0x68a   : > { %v1130_v22 = vadd.f32 1e-05, %v1129_v21 }
 0x68c   : > { %1432 = vrsqrt.f32 %v1130_v22 }
 0x699   : > { %v1433_v23 = vpop.eup %1432 }
 0x69a   : > { %v1132_v24 = vmul.f32 %v1433_v23, %v1124_v16 }
 0x69c   : > { %v1140_v26 = vmul.f32 %v1273_v5, %v1132_v24 }
 0x69e   : > { %v1148_v27 = vadd.f32 %v1274_v25, %v1140_v26 }
 0x6a0   : > { %1149 = vst.msk [vmem:[%s443_s16] sm:$0xff] %vm474_vm1, %v1148_v27 }
 0x6a1 PF: > { %s21_s19 = sadd.s32 1, %s1456_s19   ;;  %s1705_s17 = smov %s1452_s18 }
 0x6a2   : > { %p18_p5 = scmp.ge.s32.totalorder %s21_s19, 4   ;;  %s1706_s18 = smov %s1708_s20 }
 0x6a4   :  { %20 = sbr.rel (!%p18_p5) target bundleno = 2 (0x2), region = 100 }

</bundles_post_ra>
